<compile_context>
chip_gen: v7x
topology: tpu7x:2x2x1
jax: 0.10.0
libtpu: 0.0.40
codegen_flags: <defaults>
</compile_context>

<pallas_src>
import functools

import numpy as np
import jax
import jax.numpy as jnp
from jax import lax
from jax.experimental import pallas as pl
from jax.experimental.pallas import tpu as pltpu


def _r8(n):
    return -(-int(n) // 8) * 8


def _r128(n):
    return -(-int(n) // 128) * 128


# Row indices inside the bias / row-vector slab.
_VB0A, _VB0B, _VW1N, _VB1, _VB2A, _VB2B, _VW3N, _VW3S, _VB3, _VA2 = range(10)

_TASKS_PER_BLOCK = 8     # tasks stacked per grid step (sublane batching)


# --------------------------------------------------------------------------- #
# Pallas kernel (one grid step = TB tasks)
# --------------------------------------------------------------------------- #
def _task_mem_encoder_kernel(
    x_ref,                      # (TB*N, E) f32: samples of the TB tasks, task-major
    y_ref,                      # (8, TB*N) f32: row 0 holds the flattened labels
    w_ref,                      # (WR, WL) f32 packed matrix slab (resident)
    v_ref,                      # (16, WL) f32 packed bias / row-vector slab (resident)
    a_ref,                      # (AR, AL) f32 packed static task-structure slab (resident)
    out_ref,                    # (TB, 2*T): row b = [task_emb_b | task_mem_emb_b]
    *, C, N, TB, max_shot, temperature,
    E, S, V, T, K,
    r_w0a, r_w0b, r_w1, r_w2a, r_w2b, r_w3, r_mem, r_memT,
    r_sel, r_seg, r_wsim,
):
    f32 = jnp.float32
    R = TB * C                                                        # stacked (task, class) rows
    L = TB * N                                                        # stacked (task, sample) rows

    # ---- en_layer0 over all TB*N sample rows at once -------------------------
    x = x_ref[...]                                                    # (L, E)
    w0a = w_ref[r_w0a:r_w0a + E, 0:E]
    w0b = w_ref[r_w0b:r_w0b + E, 0:E]
    b0a = v_ref[_VB0A:_VB0A + 1, 0:E]
    b0b = v_ref[_VB0B:_VB0B + 1, 0:E]
    h = jnp.maximum(jnp.dot(x, w0a, preferred_element_type=f32) + b0a, 0.0)
    xe = jnp.dot(h, w0b, preferred_element_type=f32) + b0b            # (L, E)

    # ---- per-(task, class) masked statistic pooling (single fused MXU push) --
    ylab = y_ref[0:1, :]                                              # (1, L) labels as f32
    sel = a_ref[r_sel:r_sel + R, 0:L]                                 # class id / -1 cross-task
    mask = (sel == ylab).astype(f32)                                  # (R, L) block-diag one-hot
    counts = jnp.sum(mask, axis=1, keepdims=True)                     # (R, 1)
    inv_counts = pl.reciprocal(jnp.maximum(counts, 1.0))              # clamp: absent class stays finite
    stacked = jnp.concatenate([xe, xe * xe], axis=-1)                 # (L, 2E)
    pooled = jnp.dot(mask, stacked, preferred_element_type=f32)       # (R, 2E)
    sums = pooled[:, 0:E]
    ex2 = pooled[:, E:2 * E]
    means = sums * inv_counts                                         # (R, E)
    ssd = jnp.maximum(ex2 - counts * means * means, 0.0)              # clamp f32 cancellation
    var = jnp.where(counts > 1.0,
                    ssd * pl.reciprocal(jnp.maximum(counts - 1.0, 1.0)),
                    0.0)                                              # unbiased; 0 if 1 sample
    n_c = (counts - 1.0) * (1.0 / (max_shot - 1.0))                   # (R, 1)

    # ---- sta_inter_layer: fused [var | mean] @ W1[:, :2E].T + n*w1n + b1 -----
    w1vm = w_ref[r_w1:r_w1 + 2 * E, 0:S]
    w1n = v_ref[_VW1N:_VW1N + 1, 0:S]
    b1 = v_ref[_VB1:_VB1 + 1, 0:S]
    vm = jnp.concatenate([var, means], axis=-1)                       # (R, 2E)
    s = jnp.maximum(jnp.dot(vm, w1vm, preferred_element_type=f32)
                    + n_c * w1n + b1, 0.0)                            # (R, S)

    # ---- en_layer: Linear -> ReLU -> Linear ----------------------------------
    w2a = w_ref[r_w2a:r_w2a + S, 0:V]
    w2b = w_ref[r_w2b:r_w2b + V, 0:V]
    b2a = v_ref[_VB2A:_VB2A + 1, 0:V]
    b2b = v_ref[_VB2B:_VB2B + 1, 0:V]
    v1 = jnp.maximum(jnp.dot(s, w2a, preferred_element_type=f32) + b2a, 0.0)
    v = jnp.dot(v1, w2b, preferred_element_type=f32) + b2b            # (R, V)

    # ---- pairwise cosine similarity, per task via static (j-i) weights ------
    sumsq = jnp.sum(means * means, axis=1, keepdims=True)             # (R, 1)
    mean_norm = means * lax.rsqrt(jnp.maximum(sumsq, 1e-14))
    gram = lax.dot_general(mean_norm, mean_norm, (((1,), (1,)), ((), ())),
                           preferred_element_type=f32)                # (R, R)
    wsim = a_ref[r_wsim:r_wsim + R, 0:R]                              # (j-i) within task, else 0
    simrow = jnp.sum(wsim * gram, axis=1, keepdims=True)              # (R, 1)

    # ---- per-task pooling over classes (one fused MXU push) ------------------
    seg = a_ref[r_seg:r_seg + TB, 0:R]                                # (TB, R) class->task segments
    stack_v = jnp.concatenate([v, v * v, n_c, simrow], axis=-1)       # (R, 2V+2)
    pooled_v = jnp.dot(seg, stack_v, preferred_element_type=f32)      # (TB, 2V+2)
    v_mean = pooled_v[:, 0:V] * (1.0 / C)                             # (TB, V)
    v_ex2 = pooled_v[:, V:2 * V]
    v_n = pooled_v[:, 2 * V:2 * V + 1] * (1.0 / C)                    # (TB, 1)
    sim = pooled_v[:, 2 * V + 1:2 * V + 2]                            # (TB, 1)
    if C > 1:
        v_var = jnp.maximum(v_ex2 - C * v_mean * v_mean, 0.0) * (1.0 / (C - 1.0))
    else:
        v_var = jnp.zeros_like(v_mean)

    # ---- sta_inter_layer2: fused [v_var | v_mean] @ W3[:, :2V].T -------------
    w3vm = w_ref[r_w3:r_w3 + 2 * V, 0:T]
    w3n = v_ref[_VW3N:_VW3N + 1, 0:T]
    w3s = v_ref[_VW3S:_VW3S + 1, 0:T]
    b3 = v_ref[_VB3:_VB3 + 1, 0:T]
    vvm = jnp.concatenate([v_var, v_mean], axis=-1)                   # (TB, 2V)
    task_emb = jnp.maximum(jnp.dot(vvm, w3vm, preferred_element_type=f32)
                           + v_n * w3n + sim * w3s + b3, 0.0)         # (TB, T)

    # ---- MemoryUnit (batched over tasks via |e|^2 + |a|^2 - 2 e.a) ------------
    mem = w_ref[r_mem:r_mem + K, 0:T]                                 # (K, T)
    memT = w_ref[r_memT:r_memT + T, 0:K]                              # (T, K)
    a2 = v_ref[_VA2:_VA2 + 1, 0:K]                                    # (1, K) = ||mem_k||^2
    dots = jnp.dot(task_emb, memT, preferred_element_type=f32)        # (TB, K)
    e2 = jnp.sum(task_emb * task_emb, axis=1, keepdims=True)          # (TB, 1)
    d2 = jnp.maximum(e2 + a2 - 2.0 * dots, 0.0)                       # clamp rounding
    res = jnp.sqrt(d2)                                                # (TB, K)
    base = res * (1.0 / temperature) + 1.0                            # >= 1 -> log safe
    expo = (temperature + 1.0) / -2.0
    r = jnp.exp(expo * jnp.log(base))                                 # pow(base, expo)
    cw = r * pl.reciprocal(jnp.sum(r, axis=1, keepdims=True))         # exact recip (reaches output)
    mem_val = jnp.dot(cw, mem, preferred_element_type=f32)            # (TB, T)

    out_ref[:, 0:T] = task_emb
    out_ref[:, T:2 * T] = mem_val


# --------------------------------------------------------------------------- #
# One-time parameter packing (transposes / splits done here, NOT per call)
# --------------------------------------------------------------------------- #
def pack_params(params, *, emb_size, feat_num, task_dim, clusters_k):
    E = feat_num * emb_size
    S = emb_size
    V = emb_size // 2
    T = task_dim
    K = clusters_k

    W1 = np.asarray(params["W1"], np.float32)    # (S, 2E+1): cols [var | mean | n]
    W3 = np.asarray(params["W3"], np.float32)    # (T, 2V+2): cols [v_var | v_mean | n | sim]
    mem = np.asarray(params["mem"], np.float32)  # (K, T)

    mats = [
        ("w0a", np.asarray(params["W0a"], np.float32).T),   # (E, E)
        ("w0b", np.asarray(params["W0b"], np.float32).T),   # (E, E)
        ("w1", W1[:, :2 * E].T),                             # (2E, S)
        ("w2a", np.asarray(params["W2a"], np.float32).T),   # (S, V)
        ("w2b", np.asarray(params["W2b"], np.float32).T),   # (V, V)
        ("w3", W3[:, :2 * V].T),                             # (2V, T)
        ("mem", mem),                                        # (K, T)
        ("memT", mem.T),                                     # (T, K)
    ]
    WL = _r128(max(m.shape[1] for _, m in mats))
    offs, row = {}, 0
    for name, m in mats:
        offs[name] = row
        row += _r8(m.shape[0])                               # 8-row aligned starts
    WR = row

    wslab = np.zeros((WR, WL), np.float32)
    for name, m in mats:
        r0 = offs[name]
        wslab[r0:r0 + m.shape[0], :m.shape[1]] = m

    a2 = np.sum(mem * mem, axis=1)                           # (K,) squared norms
    vecs = [params["b0a"], params["b0b"],
            W1[:, 2 * E], params["b1"],
            params["b2a"], params["b2b"],
            W3[:, 2 * V], W3[:, 2 * V + 1], params["b3"], a2]
    VR = _r8(len(vecs))
    vslab = np.zeros((VR, WL), np.float32)
    for i, vec in enumerate(vecs):
        vec = np.asarray(vec, np.float32).reshape(-1)
        vslab[i, :vec.shape[0]] = vec

    static = dict(E=E, S=S, V=V, T=T, K=K,
                  r_w0a=offs["w0a"], r_w0b=offs["w0b"], r_w1=offs["w1"],
                  r_w2a=offs["w2a"], r_w2b=offs["w2b"], r_w3=offs["w3"],
                  r_mem=offs["mem"], r_memT=offs["memT"])
    return jnp.asarray(wslab), jnp.asarray(vslab), static


# Static per-block task-structure slab: class selector, class->task segments,
# (j-i) cosine weights. Depends only on (num_class, shots N, tasks-per-block).
@functools.lru_cache(maxsize=None)
def _make_aux(C, N, TB):
    R, L = TB * C, TB * N
    AL = _r128(max(L, R))
    sel = np.full((R, L), -1.0, np.float32)
    seg = np.zeros((TB, R), np.float32)
    wsim = np.zeros((R, R), np.float32)
    for tb in range(TB):
        seg[tb, tb * C:(tb + 1) * C] = 1.0
        for c in range(C):
            sel[tb * C + c, tb * N:(tb + 1) * N] = float(c)
        for i in range(C):
            for j in range(i + 1, C):
                wsim[tb * C + i, tb * C + j] = float(j - i)
    r_sel = 0
    r_seg = _r8(R)
    r_wsim = r_seg + _r8(TB)
    AR = r_wsim + _r8(R)
    aux = np.zeros((AR, AL), np.float32)
    aux[r_sel:r_sel + R, :L] = sel
    aux[r_seg:r_seg + TB, :R] = seg
    aux[r_wsim:r_wsim + R, :R] = wsim
    return aux, dict(r_sel=r_sel, r_seg=r_seg, r_wsim=r_wsim)


# --------------------------------------------------------------------------- #
# Forward wrappers
# --------------------------------------------------------------------------- #
def task_mem_encoder_forward_batched(x, y, packed, *, num_class, max_shot, temperature):
    """x: (B, N, E) f32, y: (B, N) int labels. Returns (B, 2*task_dim)."""
    # TODO(synk): PyTorch silently skips classes absent from y (data-dependent
    # shapes); this kernel requires every class id in [0, num_class) to appear
    # in each task's y for bit-for-bit semantics. Counts are clamped so absent
    # classes stay finite (no NaN) but the row is not dropped.
    if max_shot <= 1:
        raise ValueError("max_shot must be > 1")
    wslab, vslab, st = packed
    x = jnp.asarray(x, jnp.float32)
    y = jnp.asarray(y)
    B, N, E = x.shape
    C = num_class
    TB = _TASKS_PER_BLOCK
    G = -(-B // TB)
    B_pad = G * TB

    if B_pad != B:                      # pad to a whole number of task blocks
        x = jnp.concatenate([x, jnp.zeros((B_pad - B, N, E), jnp.float32)], axis=0)
        pad_y = jnp.broadcast_to(jnp.arange(N, dtype=jnp.int32) % C, (B_pad - B, N))
        y = jnp.concatenate([y.astype(jnp.int32), pad_y], axis=0)

    x2 = x.reshape(B_pad * N, E)                                      # task-major sample rows
    yf = y.astype(jnp.float32).reshape(G, TB * N)                     # labels along lanes
    y_lanes = jnp.broadcast_to(yf[:, None, :], (G, 8, TB * N)).reshape(G * 8, TB * N)

    aux_np, aux_offs = _make_aux(C, N, TB)
    aux = jnp.asarray(aux_np)

    T = st["T"]
    kernel = functools.partial(
        _task_mem_encoder_kernel,
        C=C, N=N, TB=TB, max_shot=float(max_shot),
        temperature=float(temperature), **st, **aux_offs)

    TBN = TB * N
    out = pl.pallas_call(
        kernel,
        out_shape=jax.ShapeDtypeStruct((B_pad, 2 * T), jnp.float32),
        grid=(G,),
        in_specs=[
            pl.BlockSpec((TBN, E), lambda t: (t, 0)),        # per-step task samples
            pl.BlockSpec((8, TBN), lambda t: (t, 0)),        # per-step labels
            pl.BlockSpec(wslab.shape, lambda t: (0, 0)),     # weights: resident across steps
            pl.BlockSpec(vslab.shape, lambda t: (0, 0)),     # biases:  resident across steps
            pl.BlockSpec(aux.shape, lambda t: (0, 0)),       # static task structure: resident
        ],
        out_specs=pl.BlockSpec((TB, 2 * T), lambda t: (t, 0)),
        compiler_params=pltpu.CompilerParams(dimension_semantics=("parallel",)),
    )(x2, y_lanes, wslab, vslab, aux)
    return out[:B]


def task_mem_encoder_forward(x, y, packed, *, num_class, max_shot, temperature):
    """Single-task API matching the PyTorch module: returns (2*task_dim,)."""
    out = task_mem_encoder_forward_batched(
        jnp.asarray(x, jnp.float32)[None], jnp.asarray(y)[None], packed,
        num_class=num_class, max_shot=max_shot, temperature=temperature)
    return out[0]


# --------------------------------------------------------------------------- #
# Deterministic parameter init (torch-Linear-like shapes)
# --------------------------------------------------------------------------- #
def init_params(key, *, task_dim, emb_size, feat_num, clusters_k):
    E = feat_num * emb_size
    S = emb_size
    V = emb_size // 2
    T = task_dim
    K = clusters_k
    keys = jax.random.split(key, 7)

    def lin(k, out_dim, in_dim):
        kw, kb = jax.random.split(k)
        bound = 1.0 / np.sqrt(in_dim)
        W = jax.random.uniform(kw, (out_dim, in_dim), jnp.float32, -bound, bound)
        b = jax.random.uniform(kb, (out_dim,), jnp.float32, -bound, bound)
        return W, b

    W0a, b0a = lin(keys[0], E, E)
    W0b, b0b = lin(keys[1], E, E)
    W1, b1 = lin(keys[2], S, 2 * E + 1)
    W2a, b2a = lin(keys[3], V, S)
    W2b, b2b = lin(keys[4], V, V)
    W3, b3 = lin(keys[5], T, 2 * V + 2)
    xav = float(np.sqrt(6.0 / (K + T)))                      # xavier_uniform bound
    mem = jax.random.uniform(keys[6], (K, T), jnp.float32, -xav, xav)
    return dict(W0a=W0a, b0a=b0a, W0b=W0b, b0b=b0b, W1=W1, b1=b1,
                W2a=W2a, b2a=b2a, W2b=W2b, b2b=b2b, W3=W3, b3=b3, mem=mem)


# --------------------------------------------------------------------------- #
# Pure-numpy reference mirroring the PyTorch forward (single task)
# --------------------------------------------------------------------------- #
def reference_forward(x, y, params, *, num_class, max_shot, temperature):
    x = np.asarray(x, np.float64)
    y = np.asarray(y)
    p = {k: np.asarray(v, np.float64) for k, v in params.items()}
    relu = lambda a: np.maximum(a, 0.0)

    xe = relu(x @ p["W0a"].T + p["b0a"]) @ p["W0b"].T + p["b0b"]
    s_rows, nc_list, mean_list = [], [], []
    for c in range(num_class):
        m = (y == c)
        if not m.any():
            continue
        cx = xe[m]
        n_c = (cx.shape[0] - 1.0) / (max_shot - 1.0)
        cvar = np.zeros(cx.shape[1]) if cx.shape[0] == 1 else np.var(cx, axis=0, ddof=1)
        cmean = np.mean(cx, axis=0)
        s_rows.append(np.concatenate([cvar, cmean, [n_c]]))
        nc_list.append(n_c)
        mean_list.append(cmean)
    s = relu(np.stack(s_rows, 0) @ p["W1"].T + p["b1"])
    v = relu(s @ p["W2a"].T + p["b2a"]) @ p["W2b"].T + p["b2b"]
    v_var = np.zeros(v.shape[1]) if v.shape[0] == 1 else np.var(v, axis=0, ddof=1)
    v_mean = np.mean(v, axis=0)
    v_n = np.mean(nc_list)
    mt = np.stack(mean_list, 0)
    mn = mt / np.maximum(np.linalg.norm(mt, axis=-1, keepdims=True), 1e-7)
    cos = mn @ mn.T
    sim = 0.0
    Lm = len(mean_list)
    for i in range(Lm):
        for j in range(i + 1, Lm):
            sim += (j - i) * cos[i, j]
    vfull = np.concatenate([v_var, v_mean, [v_n], [sim]])
    task_emb = relu(vfull @ p["W3"].T + p["b3"])
    arr = p["mem"]
    res = np.linalg.norm(task_emb - arr, axis=1, keepdims=True)
    r = np.power(res / temperature + 1.0, (temperature + 1.0) / -2.0)
    C = (r / r.sum()).T
    val = (C @ arr).reshape(-1)
    return np.concatenate([task_emb, val])


# --------------------------------------------------------------------------- #
if __name__ == "__main__":
    num_class = 4
    emb_size = 32
    feat_num = 2
    max_shot = 3
    task_dim = 16
    clusters_k = 8
    temperature = 1.0
    N = 8                      # samples per task (2 per class)
    B = 12                     # tasks (exercises padding to 2 grid steps of 8)
    E = feat_num * emb_size

    key = jax.random.PRNGKey(0)
    kp, kx, ky = jax.random.split(key, 3)
    params = init_params(kp, task_dim=task_dim, emb_size=emb_size,
                         feat_num=feat_num, clusters_k=clusters_k)
    packed = pack_params(params, emb_size=emb_size, feat_num=feat_num,
                         task_dim=task_dim, clusters_k=clusters_k)

    x = jax.random.normal(kx, (B, N, E), jnp.float32)
    labels = jnp.repeat(jnp.arange(num_class, dtype=jnp.int32), N // num_class)
    y = jnp.stack([jax.random.permutation(k, labels)
                   for k in jax.random.split(ky, B)])        # every class present per task

    out = task_mem_encoder_forward_batched(
        x, y, packed, num_class=num_class, max_shot=max_shot, temperature=temperature)
    out = jax.block_until_ready(out)
    assert out.shape == (B, 2 * task_dim)

    xs, ys = np.asarray(x), np.asarray(y)
    outs = np.asarray(out, np.float64)
    max_err = 0.0
    for b in range(B):
        ref = reference_forward(xs[b], ys[b], params, num_class=num_class,
                                max_shot=max_shot, temperature=temperature)
        max_err = max(max_err, float(np.max(np.abs(outs[b] - ref))))
    assert max_err < 5e-3, f"max abs error {max_err}"
    print("KERNEL_OK")
</pallas_src>

<mosaic_0001>
module attributes {stable_mosaic.version = 11 : i64} {
  func.func @_task_mem_encoder_kernel(%arg0: i32, %arg1: memref<64x64xf32, #tpu.memory_space<vmem>>, %arg2: memref<8x64xf32, #tpu.memory_space<vmem>>, %arg3: memref<360x128xf32, #tpu.memory_space<vmem>>, %arg4: memref<16x128xf32, #tpu.memory_space<vmem>>, %arg5: memref<72x128xf32, #tpu.memory_space<vmem>>, %arg6: memref<8x32xf32, #tpu.memory_space<vmem>>) attributes {dimension_semantics = [#tpu.dimension_semantics<parallel>], iteration_bounds = array<i64: 2>, scalar_prefetch = 0 : i64, scratch_operands = 0 : i64, tpu.core_type = #tpu.core_type<tc>, window_params = [{transform_indices = @transform_0, window_bounds = array<i64: 64, 64>}, {transform_indices = @transform_1, window_bounds = array<i64: 8, 64>}, {pipeline_mode = #tpu.pipeline_mode<synchronous>, transform_indices = @transform_2, window_bounds = array<i64: 360, 128>}, {pipeline_mode = #tpu.pipeline_mode<synchronous>, transform_indices = @transform_3, window_bounds = array<i64: 16, 128>}, {pipeline_mode = #tpu.pipeline_mode<synchronous>, transform_indices = @transform_4, window_bounds = array<i64: 72, 128>}, {transform_indices = @transform_5, window_bounds = array<i64: 8, 32>}]} {
    %c0 = arith.constant 0 : index
    %c0_0 = arith.constant 0 : index
    %0 = vector.load %arg1[%c0, %c0_0] : memref<64x64xf32, #tpu.memory_space<vmem>>, vector<64x64xf32>
    %c0_1 = arith.constant 0 : index
    %c0_2 = arith.constant 0 : index
    %1 = vector.load %arg3[%c0_1, %c0_2] : memref<360x128xf32, #tpu.memory_space<vmem>>, vector<64x64xf32>
    %c64 = arith.constant 64 : index
    %c0_3 = arith.constant 0 : index
    %2 = vector.load %arg3[%c64, %c0_3] : memref<360x128xf32, #tpu.memory_space<vmem>>, vector<64x64xf32>
    %c0_4 = arith.constant 0 : index
    %c0_5 = arith.constant 0 : index
    %3 = vector.load %arg4[%c0_4, %c0_5] : memref<16x128xf32, #tpu.memory_space<vmem>>, vector<1x64xf32>
    %c1 = arith.constant 1 : index
    %c0_6 = arith.constant 0 : index
    %4 = vector.load %arg4[%c1, %c0_6] : memref<16x128xf32, #tpu.memory_space<vmem>>, vector<1x64xf32>
    %cst = arith.constant dense<0.000000e+00> : vector<64x64xf32>
    %5 = tpu.matmul %0, %1, %cst {dimension_numbers = #tpu.dot_dimension_numbers<[1], [0], [0], [1], [0, 0, 1, 1], [], []>} : vector<64x64xf32>, vector<64x64xf32>, vector<64x64xf32> -> vector<64x64xf32>
    %6 = vector.broadcast %3 : vector<1x64xf32> to vector<64x64xf32>
    %7 = arith.addf %5, %6 : vector<64x64xf32>
    %cst_7 = arith.constant 0.000000e+00 : f32
    %8 = vector.broadcast %cst_7 : f32 to vector<64x64xf32>
    %9 = arith.maximumf %7, %8 : vector<64x64xf32>
    %cst_8 = arith.constant dense<0.000000e+00> : vector<64x64xf32>
    %10 = tpu.matmul %9, %2, %cst_8 {dimension_numbers = #tpu.dot_dimension_numbers<[1], [0], [0], [1], [0, 0, 1, 1], [], []>} : vector<64x64xf32>, vector<64x64xf32>, vector<64x64xf32> -> vector<64x64xf32>
    %11 = vector.broadcast %4 : vector<1x64xf32> to vector<64x64xf32>
    %12 = arith.addf %10, %11 : vector<64x64xf32>
    %c0_9 = arith.constant 0 : index
    %c0_10 = arith.constant 0 : index
    %13 = vector.load %arg2[%c0_9, %c0_10] : memref<8x64xf32, #tpu.memory_space<vmem>>, vector<1x64xf32>
    %c0_11 = arith.constant 0 : index
    %c0_12 = arith.constant 0 : index
    %14 = vector.load %arg5[%c0_11, %c0_12] : memref<72x128xf32, #tpu.memory_space<vmem>>, vector<32x64xf32>
    %15 = vector.broadcast %13 : vector<1x64xf32> to vector<32x64xf32>
    %16 = arith.cmpf oeq, %14, %15 : vector<32x64xf32>
    %17 = arith.extui %16 : vector<32x64xi1> to vector<32x64xi32>
    %18 = arith.sitofp %17 : vector<32x64xi32> to vector<32x64xf32>
    %cst_13 = arith.constant dense<0.000000e+00> : vector<32xf32>
    %19 = vector.multi_reduction <add>, %18, %cst_13 [1] : vector<32x64xf32> to vector<32xf32>
    %20 = vector.shape_cast %19 : vector<32xf32> to vector<32x1xf32>
    %cst_14 = arith.constant 1.000000e+00 : f32
    %21 = vector.broadcast %cst_14 : f32 to vector<32x1xf32>
    %22 = arith.maximumf %20, %21 : vector<32x1xf32>
    %23 = tpu.reciprocal %22 : vector<32x1xf32> -> vector<32x1xf32>
    %24 = arith.mulf %12, %12 : vector<64x64xf32>
    %25 = tpu.concatenate %12, %24 in 1 : vector<64x64xf32>, vector<64x64xf32> -> vector<64x128xf32>
    %cst_15 = arith.constant dense<0.000000e+00> : vector<32x128xf32>
    %26 = tpu.matmul %18, %25, %cst_15 {dimension_numbers = #tpu.dot_dimension_numbers<[1], [0], [0], [1], [0, 0, 1, 1], [], []>} : vector<32x64xf32>, vector<64x128xf32>, vector<32x128xf32> -> vector<32x128xf32>
    %27 = vector.extract_strided_slice %26 {offsets = [0, 0], sizes = [32, 64], strides = [1, 1]} : vector<32x128xf32> to vector<32x64xf32>
    %28 = vector.extract_strided_slice %26 {offsets = [0, 64], sizes = [32, 64], strides = [1, 1]} : vector<32x128xf32> to vector<32x64xf32>
    %29 = vector.broadcast %23 : vector<32x1xf32> to vector<32x64xf32>
    %30 = arith.mulf %27, %29 : vector<32x64xf32>
    %31 = vector.broadcast %20 : vector<32x1xf32> to vector<32x64xf32>
    %32 = arith.mulf %31, %30 : vector<32x64xf32>
    %33 = arith.mulf %32, %30 : vector<32x64xf32>
    %34 = arith.subf %28, %33 : vector<32x64xf32>
    %cst_16 = arith.constant 0.000000e+00 : f32
    %35 = vector.broadcast %cst_16 : f32 to vector<32x64xf32>
    %36 = arith.maximumf %34, %35 : vector<32x64xf32>
    %cst_17 = arith.constant 1.000000e+00 : f32
    %37 = vector.broadcast %cst_17 : f32 to vector<32x1xf32>
    %38 = arith.cmpf ogt, %20, %37 : vector<32x1xf32>
    %cst_18 = arith.constant 1.000000e+00 : f32
    %39 = vector.broadcast %cst_18 : f32 to vector<32x1xf32>
    %40 = arith.subf %20, %39 : vector<32x1xf32>
    %cst_19 = arith.constant 1.000000e+00 : f32
    %41 = vector.broadcast %cst_19 : f32 to vector<32x1xf32>
    %42 = arith.maximumf %40, %41 : vector<32x1xf32>
    %43 = tpu.reciprocal %42 : vector<32x1xf32> -> vector<32x1xf32>
    %44 = vector.broadcast %43 : vector<32x1xf32> to vector<32x64xf32>
    %45 = arith.mulf %36, %44 : vector<32x64xf32>
    %cst_20 = arith.constant 0.000000e+00 : f32
    %46 = vector.shape_cast %38 : vector<32x1xi1> to vector<32x1xi1>
    %47 = vector.broadcast %46 : vector<32x1xi1> to vector<32x64xi1>
    %48 = vector.broadcast %cst_20 : f32 to vector<32x64xf32>
    %49 = arith.select %47, %45, %48 : vector<32x64xi1>, vector<32x64xf32>
    %cst_21 = arith.constant 1.000000e+00 : f32
    %50 = vector.broadcast %cst_21 : f32 to vector<32x1xf32>
    %51 = arith.subf %20, %50 : vector<32x1xf32>
    %cst_22 = arith.constant 5.000000e-01 : f32
    %52 = vector.broadcast %cst_22 : f32 to vector<32x1xf32>
    %53 = arith.mulf %51, %52 : vector<32x1xf32>
    %c128 = arith.constant 128 : index
    %c0_23 = arith.constant 0 : index
    %54 = vector.load %arg3[%c128, %c0_23] : memref<360x128xf32, #tpu.memory_space<vmem>>, vector<128x32xf32>
    %c2 = arith.constant 2 : index
    %c0_24 = arith.constant 0 : index
    %55 = vector.load %arg4[%c2, %c0_24] : memref<16x128xf32, #tpu.memory_space<vmem>>, vector<1x32xf32>
    %c3 = arith.constant 3 : index
    %c0_25 = arith.constant 0 : index
    %56 = vector.load %arg4[%c3, %c0_25] : memref<16x128xf32, #tpu.memory_space<vmem>>, vector<1x32xf32>
    %57 = tpu.concatenate %49, %30 in 1 : vector<32x64xf32>, vector<32x64xf32> -> vector<32x128xf32>
    %cst_26 = arith.constant dense<0.000000e+00> : vector<32x32xf32>
    %58 = tpu.matmul %57, %54, %cst_26 {dimension_numbers = #tpu.dot_dimension_numbers<[1], [0], [0], [1], [0, 0, 1, 1], [], []>} : vector<32x128xf32>, vector<128x32xf32>, vector<32x32xf32> -> vector<32x32xf32>
    %59 = vector.broadcast %53 : vector<32x1xf32> to vector<32x32xf32>
    %60 = vector.broadcast %55 : vector<1x32xf32> to vector<32x32xf32>
    %61 = arith.mulf %59, %60 : vector<32x32xf32>
    %62 = arith.addf %58, %61 : vector<32x32xf32>
    %63 = vector.broadcast %56 : vector<1x32xf32> to vector<32x32xf32>
    %64 = arith.addf %62, %63 : vector<32x32xf32>
    %cst_27 = arith.constant 0.000000e+00 : f32
    %65 = vector.broadcast %cst_27 : f32 to vector<32x32xf32>
    %66 = arith.maximumf %64, %65 : vector<32x32xf32>
    %c256 = arith.constant 256 : index
    %c0_28 = arith.constant 0 : index
    %67 = vector.load %arg3[%c256, %c0_28] : memref<360x128xf32, #tpu.memory_space<vmem>>, vector<32x16xf32>
    %c288 = arith.constant 288 : index
    %c0_29 = arith.constant 0 : index
    %68 = vector.load %arg3[%c288, %c0_29] : memref<360x128xf32, #tpu.memory_space<vmem>>, vector<16x16xf32>
    %c4 = arith.constant 4 : index
    %c0_30 = arith.constant 0 : index
    %69 = vector.load %arg4[%c4, %c0_30] : memref<16x128xf32, #tpu.memory_space<vmem>>, vector<1x16xf32>
    %c5 = arith.constant 5 : index
    %c0_31 = arith.constant 0 : index
    %70 = vector.load %arg4[%c5, %c0_31] : memref<16x128xf32, #tpu.memory_space<vmem>>, vector<1x16xf32>
    %cst_32 = arith.constant dense<0.000000e+00> : vector<32x16xf32>
    %71 = tpu.matmul %66, %67, %cst_32 {dimension_numbers = #tpu.dot_dimension_numbers<[1], [0], [0], [1], [0, 0, 1, 1], [], []>} : vector<32x32xf32>, vector<32x16xf32>, vector<32x16xf32> -> vector<32x16xf32>
    %72 = vector.broadcast %69 : vector<1x16xf32> to vector<32x16xf32>
    %73 = arith.addf %71, %72 : vector<32x16xf32>
    %cst_33 = arith.constant 0.000000e+00 : f32
    %74 = vector.broadcast %cst_33 : f32 to vector<32x16xf32>
    %75 = arith.maximumf %73, %74 : vector<32x16xf32>
    %cst_34 = arith.constant dense<0.000000e+00> : vector<32x16xf32>
    %76 = tpu.matmul %75, %68, %cst_34 {dimension_numbers = #tpu.dot_dimension_numbers<[1], [0], [0], [1], [0, 0, 1, 1], [], []>} : vector<32x16xf32>, vector<16x16xf32>, vector<32x16xf32> -> vector<32x16xf32>
    %77 = vector.broadcast %70 : vector<1x16xf32> to vector<32x16xf32>
    %78 = arith.addf %76, %77 : vector<32x16xf32>
    %79 = arith.mulf %30, %30 : vector<32x64xf32>
    %cst_35 = arith.constant dense<0.000000e+00> : vector<32xf32>
    %80 = vector.multi_reduction <add>, %79, %cst_35 [1] : vector<32x64xf32> to vector<32xf32>
    %81 = vector.shape_cast %80 : vector<32xf32> to vector<32x1xf32>
    %cst_36 = arith.constant 9.99999982E-15 : f32
    %82 = vector.broadcast %cst_36 : f32 to vector<32x1xf32>
    %83 = arith.maximumf %81, %82 : vector<32x1xf32>
    %84 = math.rsqrt %83 : vector<32x1xf32>
    %85 = vector.broadcast %84 : vector<32x1xf32> to vector<32x64xf32>
    %86 = arith.mulf %30, %85 : vector<32x64xf32>
    %cst_37 = arith.constant dense<0.000000e+00> : vector<32x32xf32>
    %87 = tpu.matmul %86, %86, %cst_37 {dimension_numbers = #tpu.dot_dimension_numbers<[1], [1], [0], [0], [0, 0, 1, 0], [], []>} : vector<32x64xf32>, vector<32x64xf32>, vector<32x32xf32> -> vector<32x32xf32>
    %c40 = arith.constant 40 : index
    %c0_38 = arith.constant 0 : index
    %88 = vector.load %arg5[%c40, %c0_38] : memref<72x128xf32, #tpu.memory_space<vmem>>, vector<32x32xf32>
    %89 = arith.mulf %88, %87 : vector<32x32xf32>
    %cst_39 = arith.constant dense<0.000000e+00> : vector<32xf32>
    %90 = vector.multi_reduction <add>, %89, %cst_39 [1] : vector<32x32xf32> to vector<32xf32>
    %91 = vector.shape_cast %90 : vector<32xf32> to vector<32x1xf32>
    %c32 = arith.constant 32 : index
    %c0_40 = arith.constant 0 : index
    %92 = vector.load %arg5[%c32, %c0_40] : memref<72x128xf32, #tpu.memory_space<vmem>>, vector<8x32xf32>
    %93 = arith.mulf %78, %78 : vector<32x16xf32>
    %94 = tpu.concatenate %78, %93, %53, %91 in 1 : vector<32x16xf32>, vector<32x16xf32>, vector<32x1xf32>, vector<32x1xf32> -> vector<32x34xf32>
    %cst_41 = arith.constant dense<0.000000e+00> : vector<8x34xf32>
    %95 = tpu.matmul %92, %94, %cst_41 {dimension_numbers = #tpu.dot_dimension_numbers<[1], [0], [0], [1], [0, 0, 1, 1], [], []>} : vector<8x32xf32>, vector<32x34xf32>, vector<8x34xf32> -> vector<8x34xf32>
    %96 = vector.extract_strided_slice %95 {offsets = [0, 0], sizes = [8, 16], strides = [1, 1]} : vector<8x34xf32> to vector<8x16xf32>
    %cst_42 = arith.constant 2.500000e-01 : f32
    %97 = vector.broadcast %cst_42 : f32 to vector<8x16xf32>
    %98 = arith.mulf %96, %97 : vector<8x16xf32>
    %99 = vector.extract_strided_slice %95 {offsets = [0, 16], sizes = [8, 16], strides = [1, 1]} : vector<8x34xf32> to vector<8x16xf32>
    %100 = vector.extract_strided_slice %95 {offsets = [0, 32], sizes = [8, 1], strides = [1, 1]} : vector<8x34xf32> to vector<8x1xf32>
    %cst_43 = arith.constant 2.500000e-01 : f32
    %101 = vector.broadcast %cst_43 : f32 to vector<8x1xf32>
    %102 = arith.mulf %100, %101 : vector<8x1xf32>
    %103 = vector.extract_strided_slice %95 {offsets = [0, 33], sizes = [8, 1], strides = [1, 1]} : vector<8x34xf32> to vector<8x1xf32>
    %cst_44 = arith.constant 4.000000e+00 : f32
    %104 = vector.broadcast %cst_44 : f32 to vector<8x16xf32>
    %105 = arith.mulf %104, %98 : vector<8x16xf32>
    %106 = arith.mulf %105, %98 : vector<8x16xf32>
    %107 = arith.subf %99, %106 : vector<8x16xf32>
    %cst_45 = arith.constant 0.000000e+00 : f32
    %108 = vector.broadcast %cst_45 : f32 to vector<8x16xf32>
    %109 = arith.maximumf %107, %108 : vector<8x16xf32>
    %cst_46 = arith.constant 0.333333343 : f32
    %110 = vector.broadcast %cst_46 : f32 to vector<8x16xf32>
    %111 = arith.mulf %109, %110 : vector<8x16xf32>
    %c304 = arith.constant 304 : index
    %c0_47 = arith.constant 0 : index
    %112 = vector.load %arg3[%c304, %c0_47] : memref<360x128xf32, #tpu.memory_space<vmem>>, vector<32x16xf32>
    %c6 = arith.constant 6 : index
    %c0_48 = arith.constant 0 : index
    %113 = vector.load %arg4[%c6, %c0_48] : memref<16x128xf32, #tpu.memory_space<vmem>>, vector<1x16xf32>
    %c7 = arith.constant 7 : index
    %c0_49 = arith.constant 0 : index
    %114 = vector.load %arg4[%c7, %c0_49] : memref<16x128xf32, #tpu.memory_space<vmem>>, vector<1x16xf32>
    %c8 = arith.constant 8 : index
    %c0_50 = arith.constant 0 : index
    %115 = vector.load %arg4[%c8, %c0_50] : memref<16x128xf32, #tpu.memory_space<vmem>>, vector<1x16xf32>
    %116 = tpu.concatenate %111, %98 in 1 : vector<8x16xf32>, vector<8x16xf32> -> vector<8x32xf32>
    %cst_51 = arith.constant dense<0.000000e+00> : vector<8x16xf32>
    %117 = tpu.matmul %116, %112, %cst_51 {dimension_numbers = #tpu.dot_dimension_numbers<[1], [0], [0], [1], [0, 0, 1, 1], [], []>} : vector<8x32xf32>, vector<32x16xf32>, vector<8x16xf32> -> vector<8x16xf32>
    %118 = vector.broadcast %102 : vector<8x1xf32> to vector<8x16xf32>
    %119 = vector.broadcast %113 : vector<1x16xf32> to vector<8x16xf32>
    %120 = arith.mulf %118, %119 : vector<8x16xf32>
    %121 = arith.addf %117, %120 : vector<8x16xf32>
    %122 = vector.broadcast %103 : vector<8x1xf32> to vector<8x16xf32>
    %123 = vector.broadcast %114 : vector<1x16xf32> to vector<8x16xf32>
    %124 = arith.mulf %122, %123 : vector<8x16xf32>
    %125 = arith.addf %121, %124 : vector<8x16xf32>
    %126 = vector.broadcast %115 : vector<1x16xf32> to vector<8x16xf32>
    %127 = arith.addf %125, %126 : vector<8x16xf32>
    %cst_52 = arith.constant 0.000000e+00 : f32
    %128 = vector.broadcast %cst_52 : f32 to vector<8x16xf32>
    %129 = arith.maximumf %127, %128 : vector<8x16xf32>
    %c336 = arith.constant 336 : index
    %c0_53 = arith.constant 0 : index
    %130 = vector.load %arg3[%c336, %c0_53] : memref<360x128xf32, #tpu.memory_space<vmem>>, vector<8x16xf32>
    %c344 = arith.constant 344 : index
    %c0_54 = arith.constant 0 : index
    %131 = vector.load %arg3[%c344, %c0_54] : memref<360x128xf32, #tpu.memory_space<vmem>>, vector<16x8xf32>
    %c9 = arith.constant 9 : index
    %c0_55 = arith.constant 0 : index
    %132 = vector.load %arg4[%c9, %c0_55] : memref<16x128xf32, #tpu.memory_space<vmem>>, vector<1x8xf32>
    %cst_56 = arith.constant dense<0.000000e+00> : vector<8x8xf32>
    %133 = tpu.matmul %129, %131, %cst_56 {dimension_numbers = #tpu.dot_dimension_numbers<[1], [0], [0], [1], [0, 0, 1, 1], [], []>} : vector<8x16xf32>, vector<16x8xf32>, vector<8x8xf32> -> vector<8x8xf32>
    %134 = arith.mulf %129, %129 : vector<8x16xf32>
    %cst_57 = arith.constant dense<0.000000e+00> : vector<8xf32>
    %135 = vector.multi_reduction <add>, %134, %cst_57 [1] : vector<8x16xf32> to vector<8xf32>
    %136 = vector.shape_cast %135 : vector<8xf32> to vector<8x1xf32>
    %137 = vector.broadcast %136 : vector<8x1xf32> to vector<8x8xf32>
    %138 = vector.broadcast %132 : vector<1x8xf32> to vector<8x8xf32>
    %139 = arith.addf %137, %138 : vector<8x8xf32>
    %cst_58 = arith.constant 2.000000e+00 : f32
    %140 = vector.broadcast %cst_58 : f32 to vector<8x8xf32>
    %141 = arith.mulf %140, %133 : vector<8x8xf32>
    %142 = arith.subf %139, %141 : vector<8x8xf32>
    %cst_59 = arith.constant 0.000000e+00 : f32
    %143 = vector.broadcast %cst_59 : f32 to vector<8x8xf32>
    %144 = arith.maximumf %142, %143 : vector<8x8xf32>
    %145 = math.sqrt %144 : vector<8x8xf32>
    %cst_60 = arith.constant 1.000000e+00 : f32
    %146 = vector.broadcast %cst_60 : f32 to vector<8x8xf32>
    %147 = arith.mulf %145, %146 : vector<8x8xf32>
    %cst_61 = arith.constant 1.000000e+00 : f32
    %148 = vector.broadcast %cst_61 : f32 to vector<8x8xf32>
    %149 = arith.addf %147, %148 : vector<8x8xf32>
    %150 = math.log %149 : vector<8x8xf32>
    %cst_62 = arith.constant -1.000000e+00 : f32
    %151 = vector.broadcast %cst_62 : f32 to vector<8x8xf32>
    %152 = arith.mulf %151, %150 : vector<8x8xf32>
    %153 = math.exp %152 : vector<8x8xf32>
    %cst_63 = arith.constant dense<0.000000e+00> : vector<8xf32>
    %154 = vector.multi_reduction <add>, %153, %cst_63 [1] : vector<8x8xf32> to vector<8xf32>
    %155 = vector.shape_cast %154 : vector<8xf32> to vector<8x1xf32>
    %156 = tpu.reciprocal %155 : vector<8x1xf32> -> vector<8x1xf32>
    %157 = vector.broadcast %156 : vector<8x1xf32> to vector<8x8xf32>
    %158 = arith.mulf %153, %157 : vector<8x8xf32>
    %cst_64 = arith.constant dense<0.000000e+00> : vector<8x16xf32>
    %159 = tpu.matmul %158, %130, %cst_64 {dimension_numbers = #tpu.dot_dimension_numbers<[1], [0], [0], [1], [0, 0, 1, 1], [], []>} : vector<8x8xf32>, vector<8x16xf32>, vector<8x16xf32> -> vector<8x16xf32>
    %c0_65 = arith.constant 0 : index
    %c0_66 = arith.constant 0 : index
    %160 = vector.load %arg6[%c0_65, %c0_66] : memref<8x32xf32, #tpu.memory_space<vmem>>, vector<8x16xf32>
    tpu.vector_store %arg6[%c0_65, %c0_66], %129 {strides = array<i32>} : memref<8x32xf32, #tpu.memory_space<vmem>>, vector<8x16xf32>,
    %c0_67 = arith.constant 0 : index
    %c16 = arith.constant 16 : index
    %161 = vector.load %arg6[%c0_67, %c16] : memref<8x32xf32, #tpu.memory_space<vmem>>, vector<8x16xf32>
    tpu.vector_store %arg6[%c0_67, %c16], %159 {strides = array<i32>} : memref<8x32xf32, #tpu.memory_space<vmem>>, vector<8x16xf32>,
    return
  }
  func.func @transform_0(%arg0: i32) -> (i32, i32) {
    %c0_i32 = arith.constant 0 : i32
    %c0_i32_0 = arith.constant 0 : i32
    return %arg0, %c0_i32 : i32, i32
  }
  func.func @transform_1(%arg0: i32) -> (i32, i32) {
    %c0_i32 = arith.constant 0 : i32
    %c0_i32_0 = arith.constant 0 : i32
    return %arg0, %c0_i32 : i32, i32
  }
  func.func @transform_2(%arg0: i32) -> (i32, i32) {
    %c0_i32 = arith.constant 0 : i32
    %c0_i32_0 = arith.constant 0 : i32
    %c0_i32_1 = arith.constant 0 : i32
    return %c0_i32, %c0_i32_0 : i32, i32
  }
  func.func @transform_3(%arg0: i32) -> (i32, i32) {
    %c0_i32 = arith.constant 0 : i32
    %c0_i32_0 = arith.constant 0 : i32
    %c0_i32_1 = arith.constant 0 : i32
    return %c0_i32, %c0_i32_0 : i32, i32
  }
  func.func @transform_4(%arg0: i32) -> (i32, i32) {
    %c0_i32 = arith.constant 0 : i32
    %c0_i32_0 = arith.constant 0 : i32
    %c0_i32_1 = arith.constant 0 : i32
    return %c0_i32, %c0_i32_0 : i32, i32
  }
  func.func @transform_5(%arg0: i32) -> (i32, i32) {
    %c0_i32 = arith.constant 0 : i32
    %c0_i32_0 = arith.constant 0 : i32
    return %arg0, %c0_i32 : i32, i32
  }
}

</mosaic_0001>

<bundles_post_ra>
// kernel: tpu_custom_call.1
= control target key start
LH: loop header
LB: loop body
LE: loop exit
PB: predicated region body
PF: predicated region fallthrough
CT: control target
= control target key end

     0   :  { %10 = vsyncpa [#allocation3], 0  ;;  %s3069_s0 = inlined_call_operand.vmem [shape: f32[128,64], index: 0, kind: input, shape index: {}]   ;;  %s3070_s1 = inlined_call_operand.vmem [shape: f32[16,64], index: 1, kind: input, shape index: {}]   ;;  %s3071_s2 = inlined_call_operand.hbm [shape: f32[360,128], index: 2, kind: input, shape index: {}]   ;;  %s3072_s3 = inlined_call_operand.vmem [shape: f32[16,128], index: 3, kind: input, shape index: {}]   ;;  %s3073_s4 = inlined_call_operand.vmem [shape: f32[72,128], index: 4, kind: input, shape index: {}]   ;;  %s3074_s5 = inlined_call_operand.hbm [shape: f32[16,32], index: 5, kind: output, shape index: {}]  }
   0x1   :  { %11 = vsyncpa [#allocation4], 0 }
   0x2   :  { %13 = vsyncpa [#allocation4 + $0x1], 0  ;;  %s2616_s18 = smov 0   ;;  %s2618_s19 = smov 0  }
   0x3   :  { %s2620_s20 = smov 0   ;;  %s2622_s21 = smov 0  }
   0x4 LB: > { %s2637_s22 = sadd.s32 4294967295, %s2572_s21   ;;  %s1853_s23 = sadd.s32 4294967294, %s2572_s21   ;;  %s2572_s21 = sphi %s2622_s21, %s3092_s21   ;;  %s2568_s20 = sphi %s2620_s20, %s3091_s20   ;;  %s2564_s19 = sphi %s2618_s19, %s3090_s19   ;;  %s2560_s18 = sphi %s2616_s18, %s3089_s18  }
   0x5   : > { %s2641_s24 = sadd.s32 1, %s2572_s21   ;;  %s141_s25 = sadd.s32 1, %s2568_s20 }
   0x6   : > { %s138_s26 = ssub.s32 %s2572_s21, %s2641_s24  ;;  %p151_p0 = scmp.ne.s32.totalorder %s2568_s20, %s2564_s19 }
   0x7   : > { %p139_p1 = scmp.eq.s32.totalorder %s138_s26, 0  ;;  %p152_p2 = scmp.eq.s32.totalorder %s2637_s22, 1 }
   0x8   : > { %p157_p3 = scmp.ne.s32.totalorder %s2564_s19, %s2560_s18  ;;  %p158_p4 = scmp.eq.s32.totalorder %s1853_s23, 1 }
   0x9   : > { %s2652_s27 = scalar_select %p139_p1, %s2568_s20, %s141_s25  }
   0xa   : > { %p2654_p5 = por %p152_p2, %p151_p0  ;;  %p2658_p6 = por %p158_p4, %p157_p3 }
   0xb   : > { %p1854_p7 = scmp.ge.s32.totalorder %s2572_s21, 1  ;;  %p165_p8 = scmp.lt.s32.totalorder %s2572_s21, 3 }
   0xc   : > { %s3078_s28 = scalar_select %p2654_p5, 1, 0 }
   0xd   : > { %s3079_s29 = scalar_select %p2658_p6, 1, 0 }
   0xe   : > { %p3075_p9 = scmp.eq.s32.totalorder %s2637_s22, 0  ;;  %p2665_p10 = pnand %p1854_p7, %p165_p8 }
   0xf   : > { %s2574_s6 = smov [#allocation2]   ;;  %s2478_s11 = scalar_lea.hbm %s3071_s2, 5760 }
  0x10   : > { %s3080_s30 = scalar_select %p2665_p10, 1, 0 }
  0x11   : > { %s177_s7 = sshll.u32 %s2574_s6, 4  ;;  %p2340_p11 = pneg %p2665_p10  ;;  %s178_s7 = int_to_ptr.vmem [resolvable:$true] %s177_s7 }
  0x12   : > { %p2479_p13 = scmp.ne.s32.totalorder %s3071_s2, %s2478_s11  ;;  %p2485_p3 = scmp.lt.u32.totalorder %s2478_s11, %s3071_s2 }
  0x13   : > { %p2673_p12 = pnand %p3075_p9, %p2340_p11 }
  0x15   : > { %p2480_p0 = pneg %p2673_p12 }
  0x17   : > { %p2481_p1 = pnand %p2480_p0, %p2479_p13 }
  0x19   : > { %p2482_p2 = pneg %p2481_p1 }
  0x1b   : > { %p2487_p4 = pnand %p2485_p3, %p2482_p2 }
  0x1d   : > { %2490 = shalt.err (!%p2487_p4)
}
  0x1e   : > { %s2491_s16 = scalar_lea.vmem %s178_s7, 5760  ;;  %p2499_p9 = scmp.lt.s32.totalorder %s178_s7, %s178_s7 }
  0x1f   : > { %p2492_p7 = scmp.ne.s32.totalorder %s178_s7, %s2491_s16  ;;  %p2500_p6 = scmp.lt.s32.totalorder %s2491_s16, %s2491_s16 }
  0x21   : > { %p2494_p8 = pnand %p2492_p7, %p2480_p0  ;;  %p2501_p5 = por %p2500_p6, %p2499_p9 }
  0x23   : > { %p2495_p11 = pneg %p2494_p8 }
  0x25   : > { %p2502_p10 = pnand %p2501_p5, %p2495_p11 }
  0x27   : > { %2505 = shalt.err (!%p2502_p10)
}
  0x28   : > { %s2575_s17 = smov 128   ;;  %s2576_s23 = smov 8  }
  0x29   : > { %2343 = dma.hbm_to_vmem [thread:$0]  (!%p2673_p12), %s3071_s2, 5760, %s178_s7, [#allocation3], %s2575_s17, %s2575_s17, %s2576_s23  }
  0x2a   : > { %p3082_p13 = scmp.ne.s32.totalorder %s3080_s30, 0 }
  0x2b   : > { %p3083_p1 = scmp.eq.s32.totalorder (!%p3082_p13), %s2637_s22, 0 }
  0x2c   : > { %215 = sbr.rel (%p3082_p13) target bundleno = 3375 (0xd2f), region = 40 }
  0x33   : > { %2551 = dma.done.wait (%p3083_p1), [#allocation3], 5760   ;;  %p3084_p0 = pmov %p3083_p1 }
  0x34   : > { %s1860_s6 = sshll.u32 %s2637_s22, 3  ;;  %v265_v0 = vld [vmem:[#allocation2] sm:$0xff]  ;;  %v266_v1 = vld [vmem:[#allocation2 + $0x8] sm:$0xff]  ;;  %v267_v2 = vld [vmem:[#allocation2 + $0x10] sm:$0xff]  ;;  %vm287_vm0 = vcmask 523264   ;;  %p253_p6 = scmp.lt.s32.totalorder %s2637_s22, 1 }
  0x35   : > { %2553 = vsyncadd (%p3084_p0), [#allocation3], 4294961536  ;;  %p248_p5 = scmp.lt.s32.totalorder %s1860_s6, 15  ;;  %v2215_v3 = vpack.c.bf16 %v266_v1, %v265_v0  ;;  %v268_v4 = vld [vmem:[#allocation2 + $0x18] sm:$0xff]  ;;  %v269_v6 = vld [vmem:[#allocation2 + $0x20] sm:$0xff]  ;;  %s2577_s14 = smov 64  }
  0x36   : > { %v2219_v5 = vpack.c.bf16 %v268_v4, %v267_v2  ;;  %v270_v7 = vld [vmem:[#allocation2 + $0x28] sm:$0xff]  ;;  %v271_v10 = vld [vmem:[#allocation2 + $0x30] sm:$0xff]  ;;  %v273_v11 = vld [vmem:[#allocation2 + $0x40] sm:$0xff]  ;;  %s254_s15 = scalar_select %p253_p6, %s2637_s22, 1  ;;  %vm987_vm9 = vcmask 261120   ;;  %vm1093_vm11 = vcmask 130048  }
  0x37   : > { %s3094_s6 = smov (!%p248_p5, %s1860_s6), 15  ;;  %2216 = vmatprep.subr.bf16.mxu0 %v2215_v3  ;;  %v2223_v9 = vpack.c.bf16 %v270_v7, %v269_v6  ;;  %v274_v12 = vld [vmem:[#allocation2 + $0x48] sm:$0xff]  ;;  %v272_v13 = vld [vmem:[#allocation2 + $0x38] sm:$0xff]  ;;  %v275_v15 = vld [vmem:[#allocation2 + $0x50] sm:$0xff]  ;;  %s2579_s12 = smov 16   ;;  %vm2581_vm12 = vmmov 0  }
  0x38   : > { %s1861_s9 = sshll.u32 %s3094_s6, 3  ;;  %2218 = vmatpush3.bf16.msra.mxu0 %v2215_v3  ;;  %v2231_v14 = vpack.c.bf16 %v274_v12, %v273_v11  ;;  %v276_v16 = vld [vmem:[#allocation2 + $0x58] sm:$0xff]  ;;  %v277_v18 = vld [vmem:[#allocation2 + $0x60] sm:$0xff]  ;;  %v278_v19 = vld [vmem:[#allocation2 + $0x68] sm:$0xff]  ;;  %v2227_v20 = vpack.c.bf16 %v272_v13, %v271_v10  ;;  %s1862_s16 = sshll.u32 %s254_s15, 3  ;;  %vm1365_vm13 = vcmask 269312  }
  0x39   : > { %s2703_s11 = scalar_lea.vmem %s3069_s0, %s1861_s9  ;;  %2220 = vmatprep.subr.bf16.mxu0 %v2219_v5  ;;  %v2235_v17 = vpack.c.bf16 %v276_v16, %v275_v15  ;;  %v2239_v21 = vpack.c.bf16 %v278_v19, %v277_v18  ;;  %v279_v29 = vld [vmem:[#allocation2 + $0x70] sm:$0xff]  ;;  %v280_v30 = vld [vmem:[#allocation2 + $0x78] sm:$0xff]  ;;  %v1863_v32 = vld [vmem:[%s3072_s3] ss:$0 sm:$0xff]  ;;  %s256_s25 = scalar_lea.vmem %s3070_s1, %s1862_s16 }
  0x3a   : > { %v257_v8 = vld [vmem:[%s2703_s11] sm:$0xff]  ;;  %2232 = vmatprep.subr.bf16.mxu1 %v2231_v14  ;;  %v258_v22 = vld [vmem:[%s2703_s11 + $0x8] sm:$0xff]  ;;  %v259_v23 = vld [vmem:[%s2703_s11 + $0x10] sm:$0xff]  ;;  %v2243_v31 = vpack.c.bf16 %v280_v30, %v279_v29  ;;  %s2584_s15 = smov 112   ;;  %s244_s26 = sand.u32 1, %s2564_s19  }
  0x3b   : > { %2043 = vmatprep.mubr.msk.f32.mxu0 %vm287_vm0, %v257_v8  ;;  %2234 = vmatpush3.bf16.msra.mxu1 %v2231_v14  ;;  %v260_v24 = vld [vmem:[%s2703_s11 + $0x18] sm:$0xff]  ;;  %v261_v25 = vld [vmem:[%s2703_s11 + $0x20] sm:$0xff]  ;;  %v262_v26 = vld [vmem:[%s2703_s11 + $0x28] sm:$0xff]  ;;  %s1859_s10 = sshll.u32 %s244_s26, 3  ;;  %s1923_s7 = sshll.u32 %s2637_s22, 7 }
  0x3c   : > { %2222 = vmatpush3.bf16.msra.mxu0 %v2219_v5  ;;  %2236 = vmatprep.subr.bf16.mxu1 %v2235_v17  ;;  %v263_v27 = vld [vmem:[%s2703_s11 + $0x30] sm:$0xff]  ;;  %v264_v28 = vld [vmem:[%s2703_s11 + $0x38] sm:$0xff]  ;;  %v1872_v57 = vld [vmem:[%s3072_s3 + $0x1] ss:$0 sm:$0xff]  ;;  %s3010_s8 = scalar_lea.vmem [#allocation5], %s1859_s10  ;;  %s3024_s16 = scalar_lea.hbm %s3074_s5, %s1923_s7 }
  0x3d   : > { %2224 = vmatprep.subr.bf16.mxu0 %v2223_v9  ;;  %v1881_v15 = vld [vmem:[%s256_s25] ss:$0 sm:$0xff]  ;;  %vm2919_vm10 = vmpackc.low %vm287_vm0, %vm287_vm0  ;;  %s1770_s13 = sshll.u32 %s3010_s8, 4  ;;  %s1757_s17 = scalar_lea.sflag [#allocation4], %s244_s26  ;;  %s3026_s13 = int_to_ptr.vmem [resolvable:$true] %s1770_s13 }
  0x3e   : > { %v559_v16 = vld [vmem:[%s3073_s4] sm:$0xff]  ;;  %s2506_s23 = scalar_lea.vmem %s3026_s13, 128  ;;  %p3087_p10 = scmp.ne.s32.totalorder %s3078_s28, 0 }
  0x3f   : > { %2238 = vmatpush3.bf16.msra.mxu1 %v2235_v17  ;;  %vm567_vm1 = vcmp.eq.f32.partialorder %v559_v16, %v1881_v15  ;;  %p2507_p9 = scmp.ne.s32.totalorder %s3026_s13, %s2506_s23  ;;  %s2585_s22 = smov [#allocation5]  }
  0x40   : > { %2226 = vmatpush3.bf16.msra.mxu0 %v2223_v9  ;;  %2240 = vmatprep.subr.bf16.mxu1 %v2239_v21 }
  0x41   : > { %2228 = vmatprep.subr.bf16.mxu0 %v2227_v20  ;;  %p2508_p12 = pnand %p2507_p9, %p3087_p10 }
  0x43   : > { %2242 = vmatpush3.bf16.msra.mxu1 %v2239_v21  ;;  %v2578_v21 = vmov 0.0   ;;  %p2509_p2 = pneg %p2508_p12 }
  0x44   : > { %2230 = vmatpush3.bf16.msra.mxu0 %v2227_v20  ;;  %2244 = vmatprep.subr.bf16.mxu1 %v2243_v31 }
  0x47   : > { %2044 = vmatmul.mubr.msk.f32.vlgmr.msra.gmra.mrb[0].mxu0 %vm287_vm0, %v258_v22  ;;  %2246 = vmatpush3.bf16.msra.mxu1 %v2243_v31  ;;  %v1882_v22 = vsel %vm567_vm1, 1.0, %v2578_v21  ;;  %v560_v31 = vld [vmem:[%s3073_s4 + $0x8] sm:$0xff]  ;;  %vm1754_vm1 = vcmask 261248  }
  0x48   : > { %2046 = vmatprep.mubr.msk.f32.mxu0 %vm287_vm0, %v259_v23  ;;  %vm568_vm4 = vcmp.eq.f32.partialorder %v560_v31, %v1881_v15  ;;  %v820_v31 = vld [vmem:[#allocation2 + $0xa0] sm:$0xff] }
  0x4b   : > { %2047 = vmatmul.mubr.msk.f32.gmra.mrb[2].mxu0 %vm287_vm0, %v260_v24 }
  0x4c   : > { %2049 = vmatprep.mubr.msk.f32.mxu0 %vm287_vm0, %v261_v25 }
  0x4f   : > { %2050 = vmatmul.mubr.msk.f32.gmra.mrb[4].mxu0 %vm287_vm0, %v262_v26  ;;  %v561_v26 = vld [vmem:[%s3073_s4 + $0x10] sm:$0xff] }
  0x50   : > { %2052 = vmatprep.mubr.msk.f32.mxu0 %vm287_vm0, %v263_v27  ;;  %vm569_vm2 = vcmp.eq.f32.partialorder %v561_v26, %v1881_v15  ;;  %v579_v27 = vsel %vm287_vm0, %v1882_v22, 0.0  ;;  %v817_v26 = vld [vmem:[#allocation2 + $0x88] sm:$0xff] }
  0x51   : > { %v1884_v29 = vsel %vm569_vm2, 1.0, %v2578_v21 }
  0x52   : > { %v585_v30 = vsel %vm287_vm0, %v1884_v29, 0.0 }
  0x53   : > { %2053 = vmatmul.mubr.msk.f32.gmra.mrb[6].mxu0 %vm287_vm0, %v264_v28  ;;  %v562_v28 = vld [vmem:[%s3073_s4 + $0x18] sm:$0xff] }
  0x54   : > { %2099 = vmatprep.mubr.msk.f32.mxu0 %vm287_vm0, %v1882_v22  ;;  %vm570_vm3 = vcmp.eq.f32.partialorder %v562_v28, %v1881_v15 }
 0x11a   : > { %v2045_v33 = vpop.f32.mrb[0].mxu0 }
 0x11b   : > { %v384_v34 = vadd.f32 %v2045_v33, %v1863_v32  ;;  %v378_v35 = vpop.f32.mrb[1].mxu0 }
 0x11c   : > { %v379_v36 = vadd.f32 %v1863_v32, %v378_v35 }
 0x11d   : > { %v418_v39 = vmax.f32 %v384_v34, 0.0  ;;  %v1883_v34 = vsel %vm568_vm4, 1.0, %v2578_v21 }
 0x11e   : > { %v417_v37 = vmax.f32 %v379_v36, 0.0  ;;  %v2048_v38 = vpop.f32.mrb[2].mxu0  ;;  %v582_v35 = vsel %vm287_vm0, %v1883_v34, 0.0 }
 0x11f   : > { %v394_v40 = vadd.f32 %v2048_v38, %v1863_v32  ;;  %v388_v41 = vpop.f32.mrb[3].mxu0 }
 0x120   : > { %v389_v42 = vadd.f32 %v1863_v32, %v388_v41  ;;  %2071 = vmatprep.mubr.msk.f32.mxu1 %vm287_vm0, %v417_v37 }
 0x121   : > { %2072 = vmatmul.mubr.msk.f32.vlgmr.msra.gmra.mrb[0].mxu1 %vm287_vm0, %v418_v39  ;;  %v420_v45 = vmax.f32 %v394_v40, 0.0 }
 0x122   : > { %v419_v43 = vmax.f32 %v389_v42, 0.0  ;;  %v2051_v44 = vpop.f32.mrb[4].mxu0 }
 0x123   : > { %v404_v46 = vadd.f32 %v2051_v44, %v1863_v32  ;;  %v398_v47 = vpop.f32.mrb[5].mxu0 }
 0x124   : > { %v399_v48 = vadd.f32 %v1863_v32, %v398_v47  ;;  %2074 = vmatprep.mubr.msk.f32.mxu1 %vm287_vm0, %v419_v43 }
 0x125   : > { %2075 = vmatmul.mubr.msk.f32.gmra.mrb[2].mxu1 %vm287_vm0, %v420_v45  ;;  %v422_v51 = vmax.f32 %v404_v46, 0.0 }
 0x126   : > { %v421_v49 = vmax.f32 %v399_v48, 0.0  ;;  %v2054_v50 = vpop.f32.mrb[6].mxu0 }
 0x127   : > { %v414_v52 = vadd.f32 %v2054_v50, %v1863_v32  ;;  %v408_v53 = vpop.f32.mrb[7].mxu0 }
 0x128   : > { %v409_v54 = vadd.f32 %v1863_v32, %v408_v53  ;;  %2077 = vmatprep.mubr.msk.f32.mxu1 %vm287_vm0, %v421_v49  ;;  %v1885_v32 = vsel %vm570_vm3, 1.0, %v2578_v21 }
 0x129   : > { %2078 = vmatmul.mubr.msk.f32.gmra.mrb[4].mxu1 %vm287_vm0, %v422_v51  ;;  %v424_v56 = vmax.f32 %v414_v52, 0.0  ;;  %v588_v33 = vsel %vm287_vm0, %v1885_v32, 0.0 }
 0x12a   : > { %v423_v55 = vmax.f32 %v409_v54, 0.0 }
 0x12c   : > { %2080 = vmatprep.mubr.msk.f32.mxu1 %vm287_vm0, %v423_v55 }
 0x12d   : > { %2081 = vmatmul.mubr.msk.f32.gmra.mrb[6].mxu1 %vm287_vm0, %v424_v56 }
 0x1f4   : > { %v2073_v58 = vpop.f32.mrb[0].mxu1 }
 0x1f5   : > { %v2735_v59 = vadd.f32 %v2073_v58, %v1872_v57  ;;  %v519_v60 = vpop.f32.mrb[1].mxu1 }
 0x1f6   : > { %v520_v61 = vadd.f32 %v1872_v57, %v519_v60 }
 0x1f7   : > { %v600_v62 = vmul.f32 %v2735_v59, %v2735_v59 }
 0x1f8   : > { %v599_v63 = vmul.f32 %v520_v61, %v520_v61  ;;  %v2076_v0 = vpop.f32.mrb[2].mxu1 }
 0x1f9   : > { %v2739_v1 = vadd.f32 %v2076_v0, %v1872_v57  ;;  %v529_v2 = vpop.f32.mrb[3].mxu1 }
 0x1fa   : > { %v2741_v3 = vadd.f32 %v1872_v57, %v529_v2  ;;  %v2394_v4 = vpack.i.bf16 %v600_v62, %v599_v63 }
 0x1fb   : > { %v602_v5 = vmul.f32 %v2739_v1, %v2739_v1 }
 0x1fc   : > { %v601_v6 = vmul.f32 %v2741_v3, %v2741_v3  ;;  %v2079_v7 = vpop.f32.mrb[4].mxu1  ;;  %2395 = vrot.lane.b32.xlu0 %v2394_v4, %s2577_s14 }
 0x1fd   : > { %v2750_v8 = vadd.f32 %v2079_v7, %v1872_v57  ;;  %v539_v9 = vpop.f32.mrb[5].mxu1 }
 0x1fe   : > { %v540_v10 = vadd.f32 %v1872_v57, %v539_v9  ;;  %v2399_v11 = vpack.i.bf16 %v602_v5, %v601_v6 }
 0x1ff   : > { %v604_v12 = vmul.f32 %v2750_v8, %v2750_v8 }
 0x200   : > { %v603_v13 = vmul.f32 %v540_v10, %v540_v10  ;;  %v2082_v14 = vpop.f32.mrb[6].mxu1  ;;  %2400 = vrot.lane.b32.xlu0 %v2399_v11, %s2577_s14 }
 0x201   : > { %v555_v17 = vadd.f32 %v2082_v14, %v1872_v57  ;;  %v549_v18 = vpop.f32.mrb[7].mxu1 }
 0x202   : > { %v550_v19 = vadd.f32 %v1872_v57, %v549_v18  ;;  %v2404_v20 = vpack.i.bf16 %v604_v12, %v603_v13 }
 0x203   : > { %v606_v23 = vmul.f32 %v555_v17, %v555_v17 }
 0x204   : > { %v605_v24 = vmul.f32 %v550_v19, %v550_v19  ;;  %2405 = vrot.lane.b32.xlu1 %v2404_v20, %s2577_s14 }
 0x206   : > { %v2409_v25 = vpack.i.bf16 %v606_v23, %v605_v24 }
 0x208   : > { %2410 = vrot.lane.b32.xlu1 %v2409_v25, %s2577_s14  ;;  %v816_v25 = vld [vmem:[#allocation2 + $0x80] sm:$0xff] }
 0x209   : > { %v2263_v28 = vpack.c.bf16 %v817_v26, %v816_v25 }
 0x20b   : > { %2264 = vmatprep.subr.bf16.mxu1 %v2263_v28 }
 0x20c   : > { %2266 = vmatpush3.bf16.msra.mxu1 %v2263_v28 }
 0x21f   : > { %580 = vadd.xlane.f32.xlu0 %v579_v27  ;;  %v818_v27 = vld [vmem:[#allocation2 + $0x90] sm:$0xff] }
 0x223   : > { %586 = vadd.xlane.f32.xlu0 %v585_v30 }
 0x227   : > { %589 = vadd.xlane.f32.xlu0 %v588_v33 }
 0x22c   : > { %583 = vadd.xlane.f32.xlu1 %v582_v35  ;;  %v823_v35 = vld [vmem:[#allocation2 + $0xb8] sm:$0xff] }
 0x26e   : > { %v2396_v36 = vpop.permute.xlu0 %2395 }
 0x26f   : > { %v2398_v37 = vunpack.i.h.bf16 %v2396_v36  ;;  %v2397_v38 = vunpack.i.l.bf16 %v2396_v36 }
 0x271   : > { %v639_v39 = vsel %vm287_vm0, %v520_v61, %v2397_v38  ;;  %v640_v40 = vsel %vm287_vm0, %v2735_v59, %v2398_v37  ;;  %v824_v37 = vld [vmem:[#allocation2 + $0xc0] sm:$0xff]  ;;  %v825_v38 = vld [vmem:[#allocation2 + $0xc8] sm:$0xff] }
 0x272   : > { %v2401_v41 = vpop.permute.xlu0 %2400  ;;  %v2247_v42 = vpack.c.bf16 %v640_v40, %v639_v39  ;;  %v2279_v39 = vpack.c.bf16 %v825_v38, %v824_v37  ;;  %v826_v40 = vld [vmem:[#allocation2 + $0xd0] sm:$0xff] }
 0x273   : > { %v2403_v43 = vunpack.i.h.bf16 %v2401_v41  ;;  %v2402_v44 = vunpack.i.l.bf16 %v2401_v41  ;;  %v827_v41 = vld [vmem:[#allocation2 + $0xd8] sm:$0xff] }
 0x274   : > { %2248 = vmatprep.subr.bf16.mxu0 %v2247_v42 }
 0x275   : > { %2250 = vmatpush3.bf16.msra.mxu0 %v2247_v42  ;;  %v641_v45 = vsel %vm287_vm0, %v2741_v3, %v2402_v44  ;;  %v642_v46 = vsel %vm287_vm0, %v2739_v1, %v2403_v43  ;;  %v2283_v42 = vpack.c.bf16 %v827_v41, %v826_v40  ;;  %v828_v43 = vld [vmem:[#allocation2 + $0xe0] sm:$0xff]  ;;  %v829_v44 = vld [vmem:[#allocation2 + $0xe8] sm:$0xff] }
 0x276   : > { %v2406_v47 = vpop.permute.xlu1 %2405  ;;  %v2251_v48 = vpack.c.bf16 %v642_v46, %v641_v45  ;;  %v2287_v45 = vpack.c.bf16 %v829_v44, %v828_v43 }
 0x277   : > { %v2408_v49 = vunpack.i.h.bf16 %v2406_v47  ;;  %v2407_v50 = vunpack.i.l.bf16 %v2406_v47 }
 0x278   : > { %2252 = vmatprep.subr.bf16.mxu0 %v2251_v48 }
 0x279   : > { %2254 = vmatpush3.bf16.msra.mxu0 %v2251_v48  ;;  %v643_v51 = vsel %vm287_vm0, %v540_v10, %v2407_v50  ;;  %v644_v52 = vsel %vm287_vm0, %v2750_v8, %v2408_v49 }
 0x27a   : > { %v2411_v53 = vpop.permute.xlu1 %2410  ;;  %v2255_v54 = vpack.c.bf16 %v644_v52, %v643_v51 }
 0x27b   : > { %v2413_v55 = vunpack.i.h.bf16 %v2411_v53  ;;  %v2412_v56 = vunpack.i.l.bf16 %v2411_v53  ;;  %v830_v53 = vld [vmem:[#allocation2 + $0xf0] sm:$0xff] }
 0x27c   : > { %2256 = vmatprep.subr.bf16.mxu0 %v2255_v54 }
 0x27d   : > { %2258 = vmatpush3.bf16.msra.mxu0 %v2255_v54  ;;  %v645_v57 = vsel %vm287_vm0, %v550_v19, %v2412_v56  ;;  %v646_v58 = vsel %vm287_vm0, %v555_v17, %v2413_v55  ;;  %v831_v54 = vld [vmem:[#allocation2 + $0xf8] sm:$0xff] }
 0x27e   : > { %v2259_v59 = vpack.c.bf16 %v646_v58, %v645_v57  ;;  %v2291_v55 = vpack.c.bf16 %v831_v54, %v830_v53  ;;  %v975_v54 = vld [vmem:[#allocation2 + $0x100] sm:$0xff] }
 0x280   : > { %2260 = vmatprep.subr.bf16.mxu0 %v2259_v59 }
 0x281   : > { %2262 = vmatpush3.bf16.msra.mxu0 %v2259_v59 }
 0x284   : > { %2100 = vmatmul.mubr.msk.f32.vlgmr.msra.gmra.mrb[8].mxu0 %vm287_vm0, %v1883_v34  ;;  %v822_v34 = vld [vmem:[#allocation2 + $0xb0] sm:$0xff] }
 0x285   : > { %2102 = vmatprep.mubr.msk.f32.mxu0 %vm287_vm0, %v1884_v29  ;;  %v819_v29 = vld [vmem:[#allocation2 + $0x98] sm:$0xff]  ;;  %v2275_v36 = vpack.c.bf16 %v823_v35, %v822_v34 }
 0x286   : > { %v2267_v30 = vpack.c.bf16 %v819_v29, %v818_v27 }
 0x288   : > { %2103 = vmatmul.mubr.msk.f32.gmra.mrb[10].mxu0 %vm287_vm0, %v1885_v32  ;;  %v821_v32 = vld [vmem:[#allocation2 + $0xa8] sm:$0xff]  ;;  %2268 = vmatprep.subr.bf16.mxu1 %v2267_v30 }
 0x289   : > { %v2271_v33 = vpack.c.bf16 %v821_v32, %v820_v31  ;;  %2270 = vmatpush3.bf16.msra.mxu1 %v2267_v30 }
 0x28b   : > { %2272 = vmatprep.subr.bf16.mxu1 %v2271_v33 }
 0x28d   : > { %2274 = vmatpush3.bf16.msra.mxu1 %v2271_v33 }
 0x28e   : > { %2276 = vmatprep.subr.bf16.mxu1 %v2275_v36 }
 0x291   : > { %2278 = vmatpush3.bf16.msra.mxu1 %v2275_v36 }
 0x292   : > { %2280 = vmatprep.subr.bf16.mxu1 %v2279_v39 }
 0x295   : > { %2282 = vmatpush3.bf16.msra.mxu1 %v2279_v39 }
 0x296   : > { %2284 = vmatprep.subr.bf16.mxu1 %v2283_v42 }
 0x299   : > { %2286 = vmatpush3.bf16.msra.mxu1 %v2283_v42 }
 0x29a   : > { %2288 = vmatprep.subr.bf16.mxu1 %v2287_v45 }
 0x29d   : > { %2290 = vmatpush3.bf16.msra.mxu1 %v2287_v45 }
 0x29e   : > { %2292 = vmatprep.subr.bf16.mxu1 %v2291_v55 }
 0x2a1   : > { %2294 = vmatpush3.bf16.msra.mxu1 %v2291_v55  ;;  %v976_v55 = vld [vmem:[#allocation2 + $0x108] sm:$0xff] }
 0x2ac   : > { %v2796_v60 = vpop.xlane.xlu0 %580 }
 0x2ad   : > { %v591_v0 = vmax.f32 %v2796_v60, 1.0  ;;  %v2848_v47 = vadd.f32 -1.0, %v2796_v60  ;;  %vm780_vm6 = vcmp.gt.f32.partialorder %v2796_v60, 1.0 }
 0x2af   : > { %v788_v49 = vmax.f32 %v2848_v47, 1.0 }
 0x2b0   : > { %v2798_v61 = vpop.xlane.xlu0 %586 }
 0x2b1   : > { %v593_v2 = vmax.f32 %v2798_v61, 1.0  ;;  %v2853_v50 = vadd.f32 -1.0, %v2798_v61  ;;  %vm782_vm7 = vcmp.gt.f32.partialorder %v2798_v61, 1.0 }
 0x2b3   : > { %v790_v51 = vmax.f32 %v2853_v50, 1.0 }
 0x2b4   : > { %v2804_v1 = vpop.xlane.xlu0 %589 }
 0x2b5   : > { %v594_v3 = vmax.f32 %v2804_v1, 1.0  ;;  %v2857_v52 = vadd.f32 -1.0, %v2804_v1  ;;  %vm783_vm8 = vcmp.gt.f32.partialorder %v2804_v1, 1.0 }
 0x2b7   : > { %v791_v56 = vmax.f32 %v2857_v52, 1.0 }
 0x2b9   : > { %v2800_v62 = vpop.xlane.xlu1 %583 }
 0x2ba   : > { %v592_v63 = vmax.f32 %v2800_v62, 1.0  ;;  %v2845_v46 = vadd.f32 -1.0, %v2800_v62  ;;  %vm781_vm5 = vcmp.gt.f32.partialorder %v2800_v62, 1.0 }
 0x2bc   : > { %2446 = vrcp.f32 %v592_v63  ;;  %v789_v48 = vmax.f32 %v2845_v46, 1.0 }
 0x2bd   : > { %2448 = vrcp.f32 %v591_v0 }
 0x2be   : > { %2450 = vrcp.f32 %v593_v2 }
 0x2bf   : > { %2452 = vrcp.f32 %v594_v3 }
 0x2c0   : > { %2454 = vrcp.f32 %v789_v48 }
 0x2c1   : > { %2456 = vrcp.f32 %v788_v49 }
 0x2c2   : > { %2458 = vrcp.f32 %v790_v51 }
 0x2c3   : > { %2460 = vrcp.f32 %v791_v56  ;;  %v2295_v56 = vpack.c.bf16 %v976_v55, %v975_v54 }
 0x2c5   : > { %2296 = vmatprep.subr.bf16.mxu0 %v2295_v56 }
 0x2c6   : > { %v2447_v4 = vpop.eup %2446  ;;  %2298 = vmatpush3.bf16.msra.mxu0 %v2295_v56 }
 0x2c7   : > { %v2449_v5 = vpop.eup %2448 }
 0x2c8   : > { %v2451_v9 = vpop.eup %2450 }
 0x2c9   : > { %v2453_v11 = vpop.eup %2452 }
 0x2ca   : > { %v2455_v2 = vpop.eup %2454 }
 0x357   : > { %v2808_v6 = vpop.f32.mrb[8].mxu0 }
 0x358   : > { %v2811_v7 = vmul.f32 %v2447_v4, %v2808_v6  ;;  %v2813_v8 = vpop.f32.mrb[9].mxu0  ;;  %v2457_v4 = vpop.eup %2456 }
 0x359   : > { %v2816_v10 = vmul.f32 %v2449_v5, %v2813_v8 }
 0x35a   : > { %v749_v12 = vmul.f32 %v2811_v7, %v2800_v62  ;;  %v1192_v31 = vmul.f32 %v2811_v7, %v2811_v7 }
 0x35b   : > { %v2820_v13 = vpop.f32.mrb[10].mxu0  ;;  %v748_v14 = vmul.f32 %v2816_v10, %v2796_v60 }
 0x35c   : > { %v2824_v15 = vpop.f32.mrb[11].mxu0  ;;  %v753_v16 = vmul.f32 %v749_v12, %v2811_v7  ;;  %v2828_v17 = vmul.f32 %v2453_v11, %v2820_v13  ;;  %v1198_v33 = vsel %vm287_vm0, %v1192_v31, 0.0 }
 0x35d   : > { %v2831_v18 = vmul.f32 %v2451_v9, %v2824_v15  ;;  %v752_v19 = vmul.f32 %v748_v14, %v2816_v10 }
 0x35e   : > { %762 = vrot.lane.b32.xlu0 %v753_v16, %s2577_s14  ;;  %v751_v23 = vmul.f32 %v2828_v17, %v2804_v1  ;;  %v1194_v1 = vmul.f32 %v2828_v17, %v2828_v17 }
 0x35f   : > { %760 = vrot.lane.b32.xlu1 %v752_v19, %s2577_s14  ;;  %v750_v20 = vmul.f32 %v2831_v18, %v2798_v61  ;;  %v1191_v61 = vmul.f32 %v2816_v10, %v2816_v10  ;;  %v1193_v29 = vmul.f32 %v2831_v18, %v2831_v18 }
 0x360   : > { %v755_v24 = vmul.f32 %v751_v23, %v2828_v17  ;;  %v1204_v32 = vsel %vm287_vm0, %v1194_v1, 0.0 }
 0x361   : > { %v754_v22 = vmul.f32 %v750_v20, %v2831_v18  ;;  %v1201_v30 = vsel %vm287_vm0, %v1193_v29, 0.0 }
 0x363   : > { %764 = vrot.lane.b32.xlu1 %v754_v22, %s2577_s14 }
 0x367   : > { %766 = vrot.lane.b32.xlu1 %v755_v24, %s2577_s14 }
 0x3d0   : > { %v763_v57 = vpop.permute.xlu0 %762 }
 0x3d1   : > { %v773_v58 = vsub.f32 %v2808_v6, %v763_v57  ;;  %v761_v59 = vpop.permute.xlu1 %760  ;;  %v977_v57 = vld [vmem:[#allocation2 + $0x110] sm:$0xff] }
 0x3d2   : > { %v772_v63 = vsub.f32 %v2813_v8, %v761_v59  ;;  %v2459_v8 = vpop.eup %2458 }
 0x3d3   : > { %v777_v0 = vmax.f32 %v773_v58, 0.0  ;;  %v978_v58 = vld [vmem:[#allocation2 + $0x118] sm:$0xff] }
 0x3d4   : > { %v776_v3 = vmax.f32 %v772_v63, 0.0  ;;  %v2299_v59 = vpack.c.bf16 %v978_v58, %v977_v57  ;;  %v979_v63 = vld [vmem:[#allocation2 + $0x120] sm:$0xff] }
 0x3d5   : > { %v797_v5 = vmul.f32 %v2455_v2, %v777_v0  ;;  %v765_v9 = vpop.permute.xlu1 %764  ;;  %v980_v0 = vld [vmem:[#allocation2 + $0x128] sm:$0xff] }
 0x3d6   : > { %v796_v11 = vmul.f32 %v2457_v4, %v776_v3  ;;  %v774_v12 = vsub.f32 %v2824_v15, %v765_v9  ;;  %v2461_v15 = vpop.eup %2460  ;;  %2300 = vmatprep.subr.bf16.mxu0 %v2299_v59  ;;  %v2303_v2 = vpack.c.bf16 %v980_v0, %v979_v63 }
 0x3d7   : > { %v809_v14 = vsel %vm781_vm5, %v797_v5, 0.0  ;;  %2302 = vmatpush3.bf16.msra.mxu0 %v2299_v59 }
 0x3d8   : > { %v778_v16 = vmax.f32 %v774_v12, 0.0  ;;  %v2419_v6 = vpack.i.bf16 %v2811_v7, %v809_v14  ;;  %v808_v19 = vsel %vm780_vm6, %v796_v11, 0.0  ;;  %2304 = vmatprep.subr.bf16.mxu0 %v2303_v2  ;;  %v2893_v11 = vmul.f32 0.5, %v2845_v46  ;;  %v1894_v12 = vld [vmem:[%s3072_s3 + $0x2] ss:$0 sm:$0xff] }
 0x3d9   : > { %v767_v20 = vpop.permute.xlu1 %766  ;;  %v2414_v22 = vpack.i.bf16 %v2816_v10, %v808_v19  ;;  %v2899_v14 = vmul.f32 0.5, %v2848_v47  ;;  %v2910_v47 = vmul.f32 0.5, %v2853_v50 }
 0x3da   : > { %v798_v23 = vmul.f32 %v2459_v8, %v778_v16  ;;  %v775_v24 = vsub.f32 %v2820_v13, %v767_v20  ;;  %2420 = vrot.lane.b32.xlu1 %v2419_v6, %s2577_s14  ;;  %v1195_v13 = vsel %vm287_vm0, %v1191_v61, 0.0  ;;  %v875_v16 = vmul.f32 %v1894_v12, %v2893_v11  ;;  %v1895_v6 = vld [vmem:[%s3072_s3 + $0x3] ss:$0 sm:$0xff] }
 0x3db   : > { %2415 = vrot.lane.b32.xlu0 %v2414_v22, %s2577_s14  ;;  %v874_v8 = vmul.f32 %v1894_v12, %v2899_v14 }
 0x3dc   : > { %v779_v62 = vmax.f32 %v775_v24, 0.0  ;;  %v810_v60 = vsel %vm782_vm7, %v798_v23, 0.0  ;;  %v2907_v24 = vmul.f32 0.5, %v2857_v52 }
 0x3dd   : > { %v2424_v25 = vpack.i.bf16 %v2831_v18, %v810_v60 }
 0x3de   : > { %v799_v26 = vmul.f32 %v2461_v15, %v779_v62 }
 0x3df   : > { %2425 = vrot.lane.b32.xlu0 %v2424_v25, %s2577_s14 }
 0x3e0   : > { %v811_v27 = vsel %vm783_vm8, %v799_v26, 0.0 }
 0x3e1   : > { %v2429_v28 = vpack.i.bf16 %v2828_v17, %v811_v27  ;;  %v877_v27 = vmul.f32 %v1894_v12, %v2907_v24 }
 0x3e3   : > { %2430 = vrot.lane.b32.xlu1 %v2429_v28, %s2577_s14 }
 0x3fe   : > { %1196 = vadd.xlane.f32.xlu0 %v1195_v13  ;;  %v876_v13 = vmul.f32 %v1894_v12, %v2910_v47 }
 0x402   : > { %1202 = vadd.xlane.f32.xlu0 %v1201_v30 }
 0x406   : > { %1205 = vadd.xlane.f32.xlu0 %v1204_v32 }
 0x407   : > { %1199 = vadd.xlane.f32.xlu1 %v1198_v33 }
 0x44c   : > { %v2421_v34 = vpop.permute.xlu1 %2420 }
 0x44d   : > { %v2423_v35 = vunpack.i.h.bf16 %v2421_v34  ;;  %v2422_v36 = vunpack.i.l.bf16 %v2421_v34  ;;  %v2416_v37 = vpop.permute.xlu0 %2415 }
 0x44e   : > { %v2418_v38 = vunpack.i.h.bf16 %v2416_v37  ;;  %v2417_v39 = vunpack.i.l.bf16 %v2416_v37 }
 0x44f   : > { %v867_v42 = vsel %vm287_vm0, %v2422_v36, %v2423_v35 }
 0x450   : > { %v866_v40 = vsel %vm287_vm0, %v2417_v39, %v2418_v38  ;;  %v1896_v38 = vld [vmem:[%s3072_s3 + $0x4] ss:$0 sm:$0xff] }
 0x451   : > { %2137 = vmatprep.mubr.f32.mxu1 %v866_v40  ;;  %v2426_v41 = vpop.permute.xlu0 %2425 }
 0x452   : > { %v2428_v43 = vunpack.i.h.bf16 %v2426_v41  ;;  %v2427_v44 = vunpack.i.l.bf16 %v2426_v41  ;;  %2138 = vmatmul.mubr.f32.vlgmr.msra.gmra.mrb[8].mxu1 %v867_v42 }
 0x454   : > { %v868_v45 = vsel %vm287_vm0, %v2427_v44, %v2428_v43 }
 0x455   : > { %v2431_v48 = vpop.permute.xlu1 %2430  ;;  %2140 = vmatprep.mubr.f32.mxu1 %v868_v45 }
 0x456   : > { %v2433_v49 = vunpack.i.h.bf16 %v2431_v48  ;;  %v2432_v51 = vunpack.i.l.bf16 %v2431_v48 }
 0x458   : > { %v869_v53 = vsel %vm287_vm0, %v2432_v51, %v2433_v49 }
 0x459   : > { %2141 = vmatmul.mubr.f32.gmra.mrb[10].mxu1 %v869_v53 }
 0x45a   : > { %2189 = vmatprep.mubr.msk.f32.mxu1 %vm2581_vm12, %v2578_v21 }
 0x48b   : > { %v1197_v4 = vpop.xlane.xlu0 %1196 }
 0x48c   : > { %v1207_v9 = vmax.f32 %v1197_v4, 1e-14 }
 0x48f   : > { %v1203_v34 = vpop.xlane.xlu0 %1202 }
 0x490   : > { %v1209_v37 = vmax.f32 %v1203_v34, 1e-14 }
 0x493   : > { %v1206_v35 = vpop.xlane.xlu0 %1205 }
 0x494   : > { %v1200_v3 = vpop.xlane.xlu1 %1199  ;;  %v1210_v36 = vmax.f32 %v1206_v35, 1e-14 }
 0x495   : > { %v1208_v5 = vmax.f32 %v1200_v3, 1e-14  ;;  %v1316_v3 = vld [vmem:[%s3073_s4 + $0x28] sm:$0xff] }
 0x497   : > { %2462 = vrsqrt.f32 %v1208_v5 }
 0x498   : > { %2464 = vrsqrt.f32 %v1207_v9 }
 0x499   : > { %2466 = vrsqrt.f32 %v1210_v36 }
 0x49a   : > { %2468 = vrsqrt.f32 %v1209_v37 }
 0x4a1   : > { %v2463_v46 = vpop.eup %2462 }
 0x4a2   : > { %v2465_v60 = vpop.eup %2464  ;;  %v1216_v25 = vmul.f32 %v2463_v46, %v2811_v7 }
 0x4a3   : > { %v1215_v29 = vmul.f32 %v2465_v60, %v2816_v10  ;;  %v2467_v39 = vpop.eup %2466 }
 0x4a4   : > { %v2469_v43 = vpop.eup %2468  ;;  %v1218_v45 = vmul.f32 %v2467_v39, %v2828_v17 }
 0x4a5   : > { %v2307_v1 = vpack.c.bf16 %v1216_v25, %v1215_v29  ;;  %v1217_v51 = vmul.f32 %v2469_v43, %v2831_v18 }
 0x4a7   : > { %v2313_v54 = vpack.c.bf16 %v1218_v45, %v1217_v51 }
 0x525   : > { %v2139_v19 = vpop.f32.mrb[8].mxu1 }
 0x526   : > { %v950_v20 = vadd.f32 %v2139_v19, %v875_v16  ;;  %v944_v22 = vpop.f32.mrb[9].mxu1  ;;  %v1319_v16 = vld [vmem:[%s3073_s4 + $0x40] sm:$0xff]  ;;  %v1318_v19 = vld [vmem:[%s3073_s4 + $0x38] sm:$0xff] }
 0x527   : > { %v945_v23 = vadd.f32 %v944_v22, %v874_v8 }
 0x528   : > { %v968_v62 = vadd.f32 %v1895_v6, %v950_v20 }
 0x529   : > { %v967_v15 = vadd.f32 %v1895_v6, %v945_v23 }
 0x52a   : > { %v972_v28 = vmax.f32 %v968_v62, 0.0 }
 0x52b   : > { %v971_v26 = vmax.f32 %v967_v15, 0.0  ;;  %v1901_v15 = vld [vmem:[%s3072_s3 + $0x5] ss:$0 sm:$0xff] }
 0x52c   : > { %v2142_v61 = vpop.f32.mrb[10].mxu1 }
 0x52d   : > { %v960_v52 = vadd.f32 %v2142_v61, %v877_v27  ;;  %v954_v30 = vpop.f32.mrb[11].mxu1  ;;  %2151 = vmatprep.mubr.msk.f32.mxu0 %vm987_vm9, %v971_v26 }
 0x52e   : > { %v955_v7 = vadd.f32 %v954_v30, %v876_v13  ;;  %2152 = vmatmul.mubr.msk.f32.vlgmr.msra.gmra.mrb[12].mxu0 %vm987_vm9, %v972_v28 }
 0x52f   : > { %v970_v31 = vadd.f32 %v1895_v6, %v960_v52  ;;  %2306 = vmatpush3.bf16.msra.mxu0 %v2303_v2  ;;  %v1317_v2 = vld [vmem:[%s3073_s4 + $0x30] sm:$0xff] }
 0x530   : > { %v969_v32 = vadd.f32 %v1895_v6, %v955_v7  ;;  %2309 = vmatprep.subr.msk.bf16.mxu0 %vm2919_vm10, %v2307_v1  ;;  %v2580_v7 = vmov 0.0|0.0  }
 0x531   : > { %v974_v33 = vmax.f32 %v970_v31, 0.0  ;;  %2319 = vmatprep.subr.bf16.mxu1 %v2580_v7 }
 0x532   : > { %v973_v10 = vmax.f32 %v969_v32, 0.0 }
 0x534   : > { %2154 = vmatprep.mubr.msk.f32.mxu0 %vm987_vm9, %v973_v10 }
 0x535   : > { %2155 = vmatmul.mubr.msk.f32.gmra.mrb[14].mxu0 %vm987_vm9, %v974_v33 }
 0x601   : > { %v2153_v40 = vpop.f32.mrb[12].mxu0 }
 0x602   : > { %v1072_v41 = vadd.f32 %v2153_v40, %v1896_v38  ;;  %v1066_v42 = vpop.f32.mrb[13].mxu0 }
 0x603   : > { %v1067_v44 = vadd.f32 %v1896_v38, %v1066_v42 }
 0x604   : > { %v1086_v49 = vmax.f32 %v1072_v41, 0.0 }
 0x605   : > { %v1085_v48 = vmax.f32 %v1067_v44, 0.0 }
 0x607   : > { %2161 = vmatprep.mubr.msk.f32.mxu0 %vm1093_vm11, %v1085_v48 }
 0x608   : > { %v2156_v53 = vpop.f32.mrb[14].mxu0  ;;  %2162 = vmatmul.mubr.msk.f32.vlgmr.msra.gmra.mrb[16].mxu0 %vm1093_vm11, %v1086_v49 }
 0x609   : > { %v1082_v55 = vadd.f32 %v2156_v53, %v1896_v38  ;;  %2312 = vmatpush3.bf16.xpose.msk.msra.mxu0 %vm2919_vm10, %v2307_v1  ;;  %v1076_v56 = vpop.f32.mrb[15].mxu0 }
 0x60a   : > { %v1077_v57 = vadd.f32 %v1896_v38, %v1076_v56  ;;  %2315 = vmatprep.subr.msk.bf16.mxu0 %vm2919_vm10, %v2313_v54 }
 0x60b   : > { %v1088_v58 = vmax.f32 %v1082_v55, 0.0 }
 0x60c   : > { %v1087_v17 = vmax.f32 %v1077_v57, 0.0 }
 0x60e   : > { %2164 = vmatprep.mubr.msk.f32.mxu0 %vm1093_vm11, %v1087_v17  ;;  %v2583_v17 = vmov 32  }
 0x60f   : > { %2165 = vmatmul.mubr.msk.f32.gmra.mrb[18].mxu0 %vm1093_vm11, %v1088_v58  ;;  %2444 = vset.pattern.permute.xlu1 %v2583_v17 }
 0x610   : > { %2175 = vmatprep.mubr.msk.f32.mxu0 %vm287_vm0, %v1215_v29 }
 0x611   : > { %2318 = vmatpush3.bf16.xpose.msk.msra.mxu0 %vm2919_vm10, %v2313_v54 }
 0x612   : > { %2210 = vmatprep.subr.mxu0 %v2578_v21 }
 0x618   : > { %2176 = vmatmul.mubr.msk.f32.vlgmr.msra.gmra.mrb[20].mxu0 %vm287_vm0, %v1216_v25 }
 0x619   : > { %2178 = vmatprep.mubr.msk.f32.mxu0 %vm287_vm0, %v1217_v51 }
 0x61c   : > { %2179 = vmatmul.mubr.msk.f32.gmra.mrb[22].mxu0 %vm287_vm0, %v1218_v45  ;;  %vm1670_vm0 = vcmask 64512  }
 0x61d   : > { %2212 = vmatprep.mubr.msk.f32.mxu0 %vm2581_vm12, %v2578_v21 }
 0x6db   : > { %v2163_v18 = vpop.f32.mrb[16].mxu0 }
 0x6dc   : > { %v1172_v59 = vpop.f32.mrb[17].mxu0  ;;  %v1178_v25 = vadd.f32 %v2163_v18, %v1901_v15 }
 0x6dd   : > { %v1173_v26 = vadd.f32 %v1901_v15, %v1172_v59  ;;  %v1453_v59 = vld [vmem:[#allocation2 + $0x130] sm:$0xff] }
 0x6de   : > { %v1338_v27 = vmul.f32 %v1178_v25, %v1178_v25 }
 0x6df   : > { %v1337_v28 = vmul.f32 %v1173_v26, %v1173_v26 }
 0x6e1   : > { %v2434_v30 = vpack.i.bf16 %v1338_v27, %v1337_v28 }
 0x6e2   : > { %v2166_v63 = vpop.f32.mrb[18].mxu0 }
 0x6e3   : > { %v1182_v0 = vpop.f32.mrb[19].mxu0  ;;  %v1188_v61 = vadd.f32 %v2166_v63, %v1901_v15  ;;  %v1454_v63 = vld [vmem:[#allocation2 + $0x138] sm:$0xff] }
 0x6e4   : > { %v1183_v13 = vadd.f32 %v1901_v15, %v1182_v0  ;;  %v1455_v0 = vld [vmem:[#allocation2 + $0x140] sm:$0xff] }
 0x6e5   : > { %v1340_v29 = vmul.f32 %v1188_v61, %v1188_v61 }
 0x6e6   : > { %v1339_v52 = vmul.f32 %v1183_v13, %v1183_v13 }
 0x6e8   : > { %v2439_v50 = vpack.i.bf16 %v1340_v29, %v1339_v52 }
 0x6eb   : > { %v2177_v4 = vpop.f32.mrb[20].mxu0 }
 0x6ec   : > { %v1321_v5 = vmul.f32 %v2177_v4, %v1317_v2  ;;  %v1297_v9 = vpop.f32.mrb[21].mxu0  ;;  %v2326_v2 = vpack.c.bf16 %v1454_v63, %v1453_v59 }
 0x6ed   : > { %v1320_v12 = vmul.f32 %v1316_v3, %v1297_v9  ;;  %v1456_v3 = vld [vmem:[#allocation2 + $0x148] sm:$0xff] }
 0x6ee   : > { %v1327_v6 = vsel %vm987_vm9, %v1321_v5, 0.0  ;;  %v2329_v4 = vpack.c.bf16 %v1456_v3, %v1455_v0 }
 0x6ef   : > { %1328 = vadd.xlane.f32.xlu0 %v1327_v6  ;;  %v2180_v8 = vpop.f32.mrb[22].mxu0  ;;  %v1324_v20 = vsel %vm987_vm9, %v1320_v12, 0.0 }
 0x6f0   : > { %v1323_v22 = vmul.f32 %v2180_v8, %v1319_v16  ;;  %1325 = vadd.xlane.f32.xlu1 %v1324_v20  ;;  %v1307_v46 = vpop.f32.mrb[23].mxu0  ;;  %v1569_v20 = vld [vmem:[#allocation2 + $0x158] sm:$0xff] }
 0x6f1   : > { %v1322_v23 = vmul.f32 %v1318_v19, %v1307_v46 }
 0x6f2   : > { %v1333_v62 = vsel %vm987_vm9, %v1323_v22, 0.0  ;;  %v1570_v22 = vld [vmem:[#allocation2 + $0x160] sm:$0xff] }
 0x6f3   : > { %1334 = vadd.xlane.f32.xlu0 %v1333_v62  ;;  %v1330_v60 = vsel %vm987_vm9, %v1322_v23, 0.0  ;;  %v2332_v46 = vpack.c.bf16 %v1570_v22, %v1569_v20  ;;  %v1915_v23 = vld [vmem:[%s3072_s3 + $0x6] ss:$0 sm:$0xff] }
 0x6f4   : > { %1331 = vadd.xlane.f32.xlu1 %v1330_v60  ;;  %v1917_v60 = vld [vmem:[%s3072_s3 + $0x7] ss:$0 sm:$0xff] }
 0x705   : > { %2435 = vrot.lane.b32.xlu1 %v2434_v30, %s2579_s12 }
 0x709   : > { %2440 = vrot.lane.b32.xlu0 %v2439_v50, %s2579_s12 }
 0x77c   : > { %v1329_v1 = vpop.xlane.xlu0 %1328 }
 0x77d   : > { %v1326_v31 = vpop.xlane.xlu1 %1325 }
 0x780   : > { %v1335_v32 = vpop.xlane.xlu0 %1334 }
 0x781   : > { %v1332_v10 = vpop.xlane.xlu1 %1331 }
 0x784   : > { %v2441_v33 = vpop.permute.xlu0 %2440 }
 0x785   : > { %v2443_v34 = vunpack.i.h.bf16 %v2441_v33  ;;  %v2442_v35 = vunpack.i.l.bf16 %v2441_v33  ;;  %v2436_v36 = vpop.permute.xlu1 %2435 }
 0x786   : > { %v2438_v37 = vunpack.i.h.bf16 %v2436_v36  ;;  %v2437_v38 = vunpack.i.l.bf16 %v2436_v36 }
 0x787   : > { %v1360_v39 = vsel %vm1093_vm11, %v1188_v61, %v2443_v34  ;;  %v1359_v40 = vsel %vm1093_vm11, %v1183_v13, %v2442_v35  ;;  %v1918_v61 = vld [vmem:[%s3072_s3 + $0x8] ss:$0 sm:$0xff] }
 0x788   : > { %v1358_v41 = vsel %vm1093_vm11, %v1178_v25, %v2438_v37  ;;  %v1357_v42 = vsel %vm1093_vm11, %v1173_v26, %v2437_v38  ;;  %v1364_v43 = vsel %vm987_vm9, %v1360_v39, %v2907_v24  ;;  %v1363_v44 = vsel %vm987_vm9, %v1359_v40, %v2910_v47  ;;  %v1336_v24 = vld [vmem:[%s3073_s4 + $0x20] sm:$0xff] }
 0x789   : > { %v1362_v45 = vsel %vm987_vm9, %v1358_v41, %v2893_v11  ;;  %v1361_v48 = vsel %vm987_vm9, %v1357_v42, %v2899_v14  ;;  %v1368_v54 = vsel %vm1365_vm13, %v1363_v44, %v1332_v10  ;;  %v1369_v55 = vsel %vm1365_vm13, %v1364_v43, %v1335_v32 }
 0x78a   : > { %v1366_v49 = vsel %vm1365_vm13, %v1361_v48, %v1326_v31  ;;  %v1367_v51 = vsel %vm1365_vm13, %v1362_v45, %v1329_v1  ;;  %v2323_v56 = vpack.c.bf16 %v1369_v55, %v1368_v54  ;;  %v2582_v11 = vmov 33  }
 0x78b   : > { %v2320_v53 = vpack.c.bf16 %v1367_v51, %v1366_v49  ;;  %2445 = vset.pattern.permute.xlu0 %v2582_v11  ;;  %v1568_v51 = vld [vmem:[#allocation2 + $0x150] sm:$0xff] }
 0x78c   : > { %2211 = vmatpush3.msra.mxu0 %v1568_v51 }
 0x78d   : > { %2321 = vmatpush3.bf16.msra.mxu1 %v2320_v53 }
 0x78e   : > { %2322 = vmatprep.subr.bf16.mxu1 %v2580_v7 }
 0x791   : > { %2324 = vmatpush3.bf16.msra.mxu1 %v2323_v56 }
 0x792   : > { %2325 = vmatprep.subr.bf16.mxu1 %v2580_v7 }
 0x794   : > { %2190 = vmatmul.mubr.msk.f32.vlgmr.msra.gmra.mrb[12].mxu1 %vm987_vm9, %v1336_v24 }
 0x795   : > { %2200 = vmatprep.mubr.msk.f32.mxu1 %vm2581_vm12, %v2578_v21  ;;  %2327 = vmatpush3.bf16.msra.mxu1 %v2326_v2 }
 0x796   : > { %2328 = vmatprep.subr.bf16.mxu1 %v2580_v7 }
 0x799   : > { %2330 = vmatpush3.bf16.msra.mxu1 %v2329_v4 }
 0x79a   : > { %2331 = vmatprep.subr.bf16.mxu1 %v2580_v7  ;;  %v1920_v7 = vld [vmem:[%s3072_s3 + $0x9] ss:$0 sm:$0xff] }
 0x867   : > { %v1439_v14 = vpop.f32.mrb[12].mxu1 }
 0x868   : > { %v1443_v47 = vmul.f32 0.25, %v1439_v14  ;;  %v2191_v57 = vpop.f32.mrb[13].mxu1 }
 0x86a   : > { %1465 = vrot.lane.b32.xlu0 %v1443_v47, %s2579_s12  ;;  %v1444_v58 = vmul.f32 4.0, %v1443_v47 }
 0x86c   : > { %v1445_v18 = vmul.f32 %v1444_v58, %v1443_v47 }
 0x86e   : > { %1553 = vperm.xlu0 %2445, %v1439_v14   ;;  %1447 = vrot.lane.b32.xlu1 %v1445_v18, %s2579_s12 }
 0x8dc   : > { %v1466_v6 = vpop.permute.xlu0 %1465 }
 0x8e0   : > { %v1448_v5 = vpop.permute.xlu1 %1447 }
 0x8e1   : > { %v1450_v9 = vsub.f32 %v1439_v14, %v1448_v5 }
 0x8e3   : > { %v1451_v12 = vmax.f32 %v1450_v9, 0.0 }
 0x8e5   : > { %v1452_v16 = vmul.f32 0.33333334, %v1451_v12 }
 0x8e7   : > { %1461 = vrot.lane.b32.xlu1 %v1452_v16, %s2584_s15 }
 0x8eb   : > { %1470 = vperm.xlu1 %2444, %v1443_v47  }
 0x8ed   : > { %v1554_v15 = vpop.permute.xlu0 %1553 }
 0x8ee   : > { %v1560_v27 = vmul.f32 %v1917_v60, %v1554_v15 }
 0x959   : > { %v1462_v19 = vpop.permute.xlu1 %1461 }
 0x95a   : > { %v1468_v8 = vsel %vm1093_vm11, %v1462_v19, %v1466_v6 }
 0x95b   : > { %2201 = vmatmul.mubr.msk.f32.vlgmr.msra.gmra.mrb[14].mxu1 %vm987_vm9, %v1468_v8 }
 0x95c   : > { %2207 = vmatprep.mubr.msk.f32.mxu1 %vm2581_vm12, %v2578_v21  ;;  %2333 = vmatpush3.bf16.msra.mxu1 %v2332_v46 }
 0x96a   : > { %v1471_v62 = vpop.permute.xlu1 %1470 }
 0x96b   : > { %v1477_v25 = vmul.f32 %v1915_v23, %v1471_v62 }
 0xa2e   : > { %v1547_v26 = vpop.f32.mrb[14].mxu1 }
 0xa2f   : > { %v1548_v21 = vadd.f32 %v1547_v26, %v1477_v25  ;;  %v2202_v28 = vpop.f32.mrb[15].mxu1 }
 0xa31   : > { %v1561_v13 = vadd.f32 %v1560_v27, %v1548_v21 }
 0xa33   : > { %v1566_v29 = vadd.f32 %v1918_v61, %v1561_v13 }
 0xa35   : > { %v1567_v52 = vmax.f32 %v1566_v29, 0.0 }
 0xa37   : > { %2208 = vmatmul.mubr.msk.f32.vlgmr.msra.gmra.mrb[16].mxu1 %vm1093_vm11, %v1567_v52  ;;  %v1645_v30 = vmul.f32 %v1567_v52, %v1567_v52  ;;  %1749 = vst.msk [vmem:[%s3010_s8] sm:$0xff] %vm1093_vm11, %v1567_v52 }
 0xa39   : > { %v1646_v50 = vsel %vm1093_vm11, %v1645_v30, 0.0 }
 0xa3a   : > { %1647 = vadd.xlane.f32.xlu1 %v1646_v50 }
 0xac7   : > { %v1648_v1 = vpop.xlane.xlu1 %1647 }
 0xac8   : > { %v1653_v32 = vadd.f32 %v1920_v7, %v1648_v1 }
 0xb0a   : > { %v1641_v31 = vpop.f32.mrb[16].mxu1 }
 0xb0b   : > { %v1654_v10 = vmul.f32 2.0, %v1641_v31  ;;  %v2209_v33 = vpop.f32.mrb[17].mxu1 }
 0xb0d   : > { %v1655_v34 = vsub.f32 %v1653_v32, %v1654_v10 }
 0xb0f   : > { %v1656_v35 = vmax.f32 %v1655_v34, 0.0 }
 0xb11   : > { %2470 = vrsqrt.f32 %v1656_v35  ;;  %vm1659_vm14 = vcmp.eq.f32.partialorder %v1656_v35, inf  ;;  %v1662_v38 = vand.u32 2147483648, %v1656_v35  ;;  %vm1661_vm15 = vcmp.eq.f32.partialorder %v1656_v35, 0.0 }
 0xb1b   : > { %v2471_v36 = vpop.eup %2470 }
 0xb1c   : > { %v1658_v37 = vmul.f32 %v2471_v36, %v1656_v35 }
 0xb1e   : > { %v1660_v39 = vsel %vm1659_vm14, %v1656_v35, %v1658_v37 }
 0xb1f   : > { %v1663_v40 = vsel %vm1661_vm15, %v1662_v38, %v1660_v39 }
 0xb20   : > { %v1664_v41 = vadd.f32 1.0, %v1663_v40 }
 0xb22   : > { %2472 = vlog2.f32 %v1664_v41 }
 0xb2c   : > { %v2473_v42 = vpop.eup %2472 }
 0xb2d   : > { %v1666_v43 = vmul.f32 0.6931472, %v2473_v42 }
 0xb2f   : > { %v1667_v44 = vmul.f32 -1.0, %v1666_v43 }
 0xb31   : > { %v1668_v45 = vmul.f32 1.442695, %v1667_v44 }
 0xb33   : > { %2474 = vpow2.f32 %v1668_v45 }
 0xb3d   : > { %v2475_v48 = vpop.eup %2474 }
 0xb3e   : > { %v1671_v49 = vsel %vm1670_vm0, %v2475_v48, 0.0 }
 0xb3f   : > { %1672 = vadd.xlane.f32.xlu0 %v1671_v49 }
 0xbcc   : > { %v1673_v53 = vpop.xlane.xlu0 %1672 }
 0xbcd   : > { %2476 = vrcp.f32 %v1673_v53 }
 0xbd7   : > { %v2477_v54 = vpop.eup %2476 }
 0xbd8   : > { %v1675_v55 = vmul.f32 %v2477_v54, %v2475_v48 }
 0xbda   : > { %2213 = vmatmul.mubr.msk.f32.vlgmr.msra.gmra.mrb[24].mxu0 %vm1670_vm0, %v1675_v55 }
 0xcad   : > { %v1745_v56 = vpop.f32.mrb[24].mxu0 }
 0xcae   : > { %1751 = vrot.lane.b32.xlu1 %v1745_v56, %s2579_s12  ;;  %v2214_v24 = vpop.f32.mrb[25].mxu0  ;;  %s2510_s12 = sshll.u32 %s2585_s22, 4  ;;  %s2511_s12 = int_to_ptr.vmem [resolvable:$false] %s2510_s12 }
 0xcaf   : > { %s2512_s25 = scalar_lea.vmem %s2511_s12, 256  ;;  %p2513_p3 = scmp.lt.s32.totalorder %s3026_s13, %s2511_s12 }
 0xcb0   : > { %p2514_p4 = scmp.lt.s32.totalorder %s2512_s25, %s2506_s23 }
 0xcb2   : > { %p2515_p7 = por %p2514_p4, %p2513_p3 }
 0xcb4   : > { %p2516_p8 = pnand %p2515_p7, %p2509_p2 }
 0xd20   : > { %v1752_v11 = vpop.permute.xlu1 %1751 }
 0xd21   : > { %1755 = vst.msk [vmem:[%s3010_s8] sm:$0xff] %vm1754_vm1, %v1752_v11 }
 0xd22   : > { %2519 = shalt.err (!%p2516_p8)
}
 0xd23   : > { %s2520_s26 = scalar_lea.hbm %s3024_s16, 128  ;;  %s2524_s10 = scalar_lea.hbm %s3074_s5, 256 }
 0xd24   : > { %p2521_p11 = scmp.ne.s32.totalorder %s3024_s16, %s2520_s26  ;;  %p2525_p0 = scmp.lt.u32.totalorder %s3024_s16, %s3074_s5 }
 0xd25   : > { %p2526_p5 = scmp.lt.u32.totalorder %s2524_s10, %s2520_s26  ;;  %p2528_p9 = scmp.lt.u32.totalorder %s2520_s26, %s3024_s16 }
 0xd26   : > { %p2522_p13 = pnand %p2521_p11, %p3087_p10 }
 0xd27   : > { %p2527_p6 = por %p2526_p5, %p2525_p0 }
 0xd28   : > { %p2523_p1 = pneg %p2522_p13 }
 0xd29   : > { %p2529_p12 = por %p2528_p9, %p2527_p6 }
 0xd2b   : > { %p2530_p2 = pnand %p2529_p12, %p2523_p1 }
 0xd2d   : > { %2533 = shalt.err (!%p2530_p2)
}
 0xd2e   : > { %2338 = dma.vmem_to_hbm [thread:$0]  (%p3087_p10), %s3026_s13, 128, %s3024_s16, %s1757_s17  }
 0xd2f PF: > { %p2350_p3 = scmp.ge.s32.totalorder %s2572_s21, 2  ;;  %s1782_s30 = sand.u32 1, %s2560_s18  }
 0xd30   : > { %p3088_p4 = scmp.ne.s32.totalorder %s3079_s29, 0  ;;  %s1783_s7 = scalar_lea.sflag [#allocation4], %s1782_s30 }
 0xd32   : > { %p2345_p7 = pnand %p2350_p3, %p3088_p4 }
 0xd34   : > { %2555 = dma.done.wait (!%p2345_p7), %s1783_s7, 128  }
 0xd35   : > { %2557 = vsyncadd (!%p2345_p7), %s1783_s7, 4294967168  ;;  %p16_p8 = scmp.ge.s32.totalorder %s2641_s24, 4   ;;  %s3089_s18 = smov %s2564_s19 }
 0xd36   : > { %s3090_s19 = smov %s2568_s20  ;;  %s3091_s20 = smov %s2652_s27 }
 0xd37   : > { %s3092_s21 = smov %s2641_s24  ;;  %18 = sbr.rel (!%p16_p8) target bundleno = 4 (0x4), region = 83 }
 0xd3e   :  { %1788 = vsyncpa [#allocation3], 1 }
 0xd3f   :  { %1790 = vsyncpa [#allocation3 + $0x1], 1 }
 0xd40   :  { %1791 = vsyncpa [#allocation4], 1 }
 0xd41   :  { %1793 = vsyncpa [#allocation4 + $0x1], 1 }

</bundles_post_ra>
